<compile_context>
chip_gen: v7x
topology: tpu7x:2x2x1
jax: 0.10.0
libtpu: 0.0.40
codegen_flags: <defaults>
</compile_context>

<pallas_src>
import functools

import jax
import jax.numpy as jnp
from jax.experimental import pallas as pl
from jax.experimental.pallas import tpu as pltpu

# ----- scaled-down bert-base-uncased config (structure identical, sizes small) -----
VOCAB = 64
HIDDEN = 128          # bert-base uses 768
N_LAYERS = 2          # bert-base uses 12
N_HEADS = 2           # bert-base uses 12
HEAD_DIM = HIDDEN // N_HEADS
INTERMEDIATE = 256    # bert-base uses 3072
MAX_POS = 32
TYPE_VOCAB = 2
LN_EPS = 1e-12
B, S = 2, 8

# Token-row tile (per perf review: >=128, 256-512 at real BERT-base sizes).
# On v7x prefer 256 (not 512) for the fused FFN kernel: 64 MiB physical VMEM.
ROW_TILE = 256
# Matmul N/K tiles sized for the 2x256^2 MXU on v6e/v7x.
MM_TILE_N = 256
MM_TILE_K = 256


def _pick_tile(dim, pref, align):
    """Largest tile <= pref that divides `dim` and is a multiple of `align`.

    Falls back to the full extent (full-extent blocks are always legal), so no
    rows/cols are ever silently dropped by floor-divided grids.
    """
    if dim <= pref:
        return dim
    t = (pref // align) * align
    while t >= align:
        if dim % t == 0:
            return t
        t -= align
    return dim


# ------------------------------ shared math ---------------------------------

def _gelu(x):
    # tanh-approx GELU ("gelu_new").
    # TODO(synk): HF bert-base-uncased default is exact erf GELU; tanh approx
    # kept for guaranteed EUP lowering (tiny numerical difference).
    return 0.5 * x * (1.0 + jnp.tanh(0.7978845608028654 * (x + 0.044715 * x * x * x)))


def _layernorm(x, g, b):
    # x is f32 inside the kernel (upcast from the bf16 HBM stream).
    mu = jnp.mean(x, axis=-1, keepdims=True)
    xc = x - mu
    var = jnp.mean(xc * xc, axis=-1, keepdims=True)
    inv = jax.lax.rsqrt(var + LN_EPS)
    return xc * inv * g + b


# ----------------------------- Pallas kernels ------------------------------

def _linear_kernel(x_ref, w_ref, b_ref, o_ref, acc_ref):
    """Tiled y = x @ w + b with f32 VMEM accumulator over the K grid axis."""
    @pl.when(pl.program_id(2) == 0)
    def _():
        acc_ref[...] = jnp.zeros_like(acc_ref)

    # x is already bf16 in HBM -> no per-step VPU cast, half the x-tile DMA bytes.
    acc_ref[...] += jnp.dot(x_ref[...], w_ref[...],
                            preferred_element_type=jnp.float32)

    @pl.when(pl.program_id(2) == pl.num_programs(2) - 1)
    def _():
        o_ref[...] = (acc_ref[...] + b_ref[...]).astype(o_ref.dtype)


def linear(x, w, b, out_dtype=jnp.bfloat16,
           tm=ROW_TILE, tn=MM_TILE_N, tk=MM_TILE_K):
    """x:(M,K) bf16, w:(K,N) bf16, b:(N,) f32 -> (M,N) out_dtype."""
    M, K = x.shape
    N = w.shape[1]
    tm = _pick_tile(M, tm, 8)
    tn = _pick_tile(N, tn, 128)
    tk = _pick_tile(K, tk, 128)
    # TODO(synk): at real BERT-base sizes set vmem_limit_bytes from the actual
    # tile + weight + accumulator footprint (the 32 MiB scoped default binds).
    return pl.pallas_call(
        _linear_kernel,
        out_shape=jax.ShapeDtypeStruct((M, N), out_dtype),
        grid=(M // tm, N // tn, K // tk),
        in_specs=[
            pl.BlockSpec((tm, tk), lambda i, j, k: (i, k)),
            pl.BlockSpec((tk, tn), lambda i, j, k: (k, j)),
            pl.BlockSpec((1, tn), lambda i, j, k: (0, j)),
        ],
        out_specs=pl.BlockSpec((tm, tn), lambda i, j, k: (i, j)),
        scratch_shapes=[pltpu.VMEM((tm, tn), jnp.float32)],
        compiler_params=pltpu.CompilerParams(
            dimension_semantics=("parallel", "parallel", "arbitrary")),
    )(x, w, b.reshape(1, N))


def _attn_proj_ln_kernel(qkv_ref, bias_ref, res_ref, wao_ref, bao_ref,
                         g_ref, beta_ref, o_ref,
                         *, scale, n_heads, head_dim, hidden):
    """All heads of one batch element: attention + attn-out projection +
    residual add + LayerNorm, fully fused (ctx never leaves VMEM)."""
    qkv = qkv_ref[0]            # (S, 3H) bf16
    bias = bias_ref[0]          # (1, S)  f32 additive key mask
    res = res_ref[0]            # (S, H)  bf16 residual

    y = jnp.zeros((qkv.shape[0], hidden), jnp.float32)
    # TODO(synk): at real BERT sizes (12 heads, S=512) move head *pairs* onto a
    # grid axis / fori_loop so every head's (S,S) score tensor is not live at
    # once (vreg spill / VMEM blowup on v7x); at 2 heads / S=8 this is moot.
    for h in range(n_heads):    # static unroll at toy size
        lo = h * head_dim
        q = qkv[:, lo:lo + head_dim]                                   # (S, Dh)
        k = qkv[:, hidden + lo:hidden + lo + head_dim]                 # (S, Dh)
        v = qkv[:, 2 * hidden + lo:2 * hidden + lo + head_dim]         # (S, Dh)
        # scores = q @ k^T (contract last dims, no explicit transpose)
        s = jax.lax.dot_general(q, k, (((1,), (1,)), ((), ())),
                                preferred_element_type=jnp.float32) * scale
        s = s + bias
        m = jnp.max(s, axis=-1, keepdims=True)
        p = jnp.exp(s - m)
        p = p * pl.reciprocal(jnp.sum(p, axis=-1, keepdims=True), approx=True)
        ctx = jnp.dot(p.astype(jnp.bfloat16), v,
                      preferred_element_type=jnp.float32)              # (S, Dh)
        # Fold this head's context straight into the attn-out projection:
        # y += ctx_h @ W_ao[h*Dh:(h+1)*Dh, :]  -> no lane-concatenate of heads.
        y = y + jnp.dot(ctx.astype(jnp.bfloat16),
                        wao_ref[lo:lo + head_dim, :],
                        preferred_element_type=jnp.float32)            # (S, H)

    x = y + bao_ref[...] + res.astype(jnp.float32)
    o_ref[0] = _layernorm(x, g_ref[...], beta_ref[...]).astype(o_ref.dtype)


def attention_proj_ln(qkv, bias, residual, wao, bao, gamma, beta):
    """qkv:(B,S,3H) bf16 fused projections; bias:(B,1,S) additive mask;
    residual:(B*S,H) bf16. Returns (B,S,H) bf16 post-LN hidden states."""
    Bb, Ss, threeH = qkv.shape
    H = threeH // 3
    vec = lambda a: a.reshape(1, -1)
    kern = functools.partial(_attn_proj_ln_kernel, scale=1.0 / (HEAD_DIM ** 0.5),
                             n_heads=N_HEADS, head_dim=HEAD_DIM, hidden=H)
    # TODO(synk): W_ao / bias / LN params have constant block indices; mark them
    # pipeline_mode=pl.Buffered(1) at real sizes to avoid double-buffering
    # resident weights (matters on v7x's 64 MiB VMEM).
    return pl.pallas_call(
        kern,
        out_shape=jax.ShapeDtypeStruct((Bb, Ss, H), jnp.bfloat16),
        grid=(Bb,),
        in_specs=[
            pl.BlockSpec((1, Ss, threeH), lambda b: (b, 0, 0)),   # qkv (bf16)
            pl.BlockSpec((1, 1, Ss), lambda b: (b, 0, 0)),        # mask bias
            pl.BlockSpec((1, Ss, H), lambda b: (b, 0, 0)),        # residual (bf16)
            pl.BlockSpec((H, H), lambda b: (0, 0)),               # W_ao (bf16)
            pl.BlockSpec((1, H), lambda b: (0, 0)),               # b_ao
            pl.BlockSpec((1, H), lambda b: (0, 0)),               # ln gamma
            pl.BlockSpec((1, H), lambda b: (0, 0)),               # ln beta
        ],
        out_specs=pl.BlockSpec((1, Ss, H), lambda b: (b, 0, 0)),
        compiler_params=pltpu.CompilerParams(dimension_semantics=("parallel",)),
    )(qkv, bias, residual.reshape(Bb, Ss, H), wao, vec(bao), vec(gamma), vec(beta))


def _ln_kernel(x_ref, g_ref, b_ref, o_ref):
    o_ref[...] = _layernorm(x_ref[...].astype(jnp.float32),
                            g_ref[...], b_ref[...]).astype(o_ref.dtype)


def layernorm(x, gamma, beta):
    """No-residual LayerNorm (embedding LN). f32 in, bf16 residual stream out."""
    M, H = x.shape
    tm = _pick_tile(M, ROW_TILE, 8)
    return pl.pallas_call(
        _ln_kernel,
        out_shape=jax.ShapeDtypeStruct((M, H), jnp.bfloat16),
        grid=(M // tm,),
        in_specs=[
            pl.BlockSpec((tm, H), lambda i: (i, 0)),
            pl.BlockSpec((1, H), lambda i: (0, 0)),
            pl.BlockSpec((1, H), lambda i: (0, 0)),
        ],
        out_specs=pl.BlockSpec((tm, H), lambda i: (i, 0)),
        compiler_params=pltpu.CompilerParams(dimension_semantics=("parallel",)),
    )(x, gamma.reshape(1, H), beta.reshape(1, H))


def _ffn_res_ln_kernel(x_ref, wi_ref, bi_ref, wo_ref, bo_ref, g_ref, beta_ref, o_ref):
    """intermediate GELU matmul + output matmul + residual + LayerNorm, fused.
    The (tm, INTERMEDIATE) activation stays in VMEM/vregs (never hits HBM)."""
    x = x_ref[...]                                     # (tm, H) bf16 residual
    h = jnp.dot(x, wi_ref[...],
                preferred_element_type=jnp.float32) + bi_ref[...]
    h = _gelu(h)                                       # f32 element-wise (v5e-safe)
    y = jnp.dot(h.astype(jnp.bfloat16), wo_ref[...],
                preferred_element_type=jnp.float32) + bo_ref[...]
    o_ref[...] = _layernorm(y + x.astype(jnp.float32),
                            g_ref[...], beta_ref[...]).astype(o_ref.dtype)


def ffn_res_ln(x, wi, bi, wo, bo, gamma, beta):
    M, H = x.shape
    I = wi.shape[1]
    tm = _pick_tile(M, ROW_TILE, 8)
    vec = lambda a: a.reshape(1, -1)
    # TODO(synk): at real BERT-base sizes set vmem_limit_bytes explicitly and
    # mark the constant-index weight specs pipeline_mode=pl.Buffered(1) (v7x).
    return pl.pallas_call(
        _ffn_res_ln_kernel,
        out_shape=jax.ShapeDtypeStruct((M, H), jnp.bfloat16),
        grid=(M // tm,),
        in_specs=[
            pl.BlockSpec((tm, H), lambda i: (i, 0)),   # x (bf16)
            pl.BlockSpec((H, I), lambda i: (0, 0)),    # W_i (bf16)
            pl.BlockSpec((1, I), lambda i: (0, 0)),    # b_i
            pl.BlockSpec((I, H), lambda i: (0, 0)),    # W_o (bf16)
            pl.BlockSpec((1, H), lambda i: (0, 0)),    # b_o
            pl.BlockSpec((1, H), lambda i: (0, 0)),    # ln gamma
            pl.BlockSpec((1, H), lambda i: (0, 0)),    # ln beta
        ],
        out_specs=pl.BlockSpec((tm, H), lambda i: (i, 0)),
        compiler_params=pltpu.CompilerParams(dimension_semantics=("parallel",)),
    )(x, wi, vec(bi), wo, vec(bo), vec(gamma), vec(beta))


def _pool_fc_kernel(cls_ref, pw_ref, pb_ref, fw_ref, fb_ref, o_ref):
    """pooler tanh(Linear) on CLS rows + fc1(H->1), fused into one tiny kernel."""
    pooled = jnp.tanh(jnp.dot(cls_ref[...], pw_ref[...],
                              preferred_element_type=jnp.float32) + pb_ref[...])
    # TODO(synk): nn.Dropout(0.4) treated as identity (eval-mode inference).
    # fc1 (H->1) as broadcast-multiply + lane reduction instead of an (H,1) MXU
    # matmul (avoids a 1-of-256-column systolic pass; output store stays tiny).
    o_ref[...] = (jnp.sum(pooled * fw_ref[...], axis=-1, keepdims=True)
                  + fb_ref[...]).astype(o_ref.dtype)


def pool_fc(cls, pw, pb, fw, fb):
    Bb, H = cls.shape
    return pl.pallas_call(
        _pool_fc_kernel,
        out_shape=jax.ShapeDtypeStruct((Bb, 1), jnp.float32),
        grid=(1,),
        in_specs=[
            pl.BlockSpec((Bb, H), lambda i: (0, 0)),   # CLS rows (bf16)
            pl.BlockSpec((H, H), lambda i: (0, 0)),    # pooler W (bf16)
            pl.BlockSpec((1, H), lambda i: (0, 0)),    # pooler b
            pl.BlockSpec((1, H), lambda i: (0, 0)),    # fc1 W as a row vector
            pl.BlockSpec((1, 1), lambda i: (0, 0)),    # fc1 b
        ],
        out_specs=pl.BlockSpec((Bb, 1), lambda i: (0, 0)),
    )(cls, pw, pb.reshape(1, H), fw.reshape(1, H), fb.reshape(1, 1))


# ------------------------------ parameters ---------------------------------

def init_params(key):
    def dense(k, shape, dtype=jnp.float32):
        return (jax.random.normal(k, shape, jnp.float32) * 0.02).astype(dtype)

    keys = iter(jax.random.split(key, 8 + N_LAYERS * 8))
    p = {
        "word_emb": dense(next(keys), (VOCAB, HIDDEN)),
        "pos_emb": dense(next(keys), (MAX_POS, HIDDEN)),
        "type_emb": dense(next(keys), (TYPE_VOCAB, HIDDEN)),
        "emb_ln_g": jnp.ones((HIDDEN,), jnp.float32),
        "emb_ln_b": jnp.zeros((HIDDEN,), jnp.float32),
        "pool_w": dense(next(keys), (HIDDEN, HIDDEN), jnp.bfloat16),
        "pool_b": jnp.zeros((HIDDEN,), jnp.float32),
        "fc1_w": dense(next(keys), (HIDDEN, 1)),
        "fc1_b": jnp.zeros((1,), jnp.float32),
        "layers": [],
    }
    for _ in range(N_LAYERS):
        p["layers"].append({
            # fused QKV weight: [Wq | Wk | Wv] along the output dim, bf16 for MXU
            "qkv_w": dense(next(keys), (HIDDEN, 3 * HIDDEN), jnp.bfloat16),
            "qkv_b": jnp.zeros((3 * HIDDEN,), jnp.float32),
            "ao_w": dense(next(keys), (HIDDEN, HIDDEN), jnp.bfloat16),
            "ao_b": jnp.zeros((HIDDEN,), jnp.float32),
            "attn_ln_g": jnp.ones((HIDDEN,), jnp.float32),
            "attn_ln_b": jnp.zeros((HIDDEN,), jnp.float32),
            "i_w": dense(next(keys), (HIDDEN, INTERMEDIATE), jnp.bfloat16),
            "i_b": jnp.zeros((INTERMEDIATE,), jnp.float32),
            "o_w": dense(next(keys), (INTERMEDIATE, HIDDEN), jnp.bfloat16),
            "o_b": jnp.zeros((HIDDEN,), jnp.float32),
            "out_ln_g": jnp.ones((HIDDEN,), jnp.float32),
            "out_ln_b": jnp.zeros((HIDDEN,), jnp.float32),
        })
    return p


# ------------------------------ forward pass --------------------------------

def bert_base_uncased_forward(params, ids, mask, token_type_ids):
    Bb, Ss = ids.shape
    M = Bb * Ss

    # embeddings (gather = plain-JAX glue), then no-residual LayerNorm (Pallas);
    # from here on the residual stream lives in HBM as bf16.
    x = (params["word_emb"][ids]
         + params["pos_emb"][jnp.arange(Ss)][None, :, :]
         + params["type_emb"][token_type_ids]).astype(jnp.float32)
    x = layernorm(x.reshape(M, HIDDEN), params["emb_ln_g"], params["emb_ln_b"])

    # additive attention-mask bias shared by all heads: (B, 1, S)
    bias = ((1.0 - mask.astype(jnp.float32)) * -10000.0)[:, None, :]

    # TODO(synk): optional at real size / small batch: prefetch the next
    # layer's QKV/FFN weights via a cross-pallas_call DMA future.
    for lyr in params["layers"]:
        # fused QKV projection: one tiled matmul, bf16 out feeds attention dots
        qkv = linear(x, lyr["qkv_w"], lyr["qkv_b"], out_dtype=jnp.bfloat16)   # (M, 3H)
        # per-batch attention over all heads + attn-out proj + residual + LN,
        # fused into one kernel (ctx never leaves VMEM)
        x = attention_proj_ln(qkv.reshape(Bb, Ss, 3 * HIDDEN), bias, x,
                              lyr["ao_w"], lyr["ao_b"],
                              lyr["attn_ln_g"], lyr["attn_ln_b"]).reshape(M, HIDDEN)
        # FFN (GELU) + residual + LayerNorm (fused; intermediate stays in VMEM)
        x = ffn_res_ln(x, lyr["i_w"], lyr["i_b"], lyr["o_w"], lyr["o_b"],
                       lyr["out_ln_g"], lyr["out_ln_b"])

    # pooler on CLS rows (this is `cls_` in the torch module) + Dropout(id) + fc1
    cls = x.reshape(Bb, Ss, HIDDEN)[:, 0, :]
    out = pool_fc(cls, params["pool_w"], params["pool_b"],
                  params["fc1_w"], params["fc1_b"])     # (B, 1)
    return out


# --------------------------------- main --------------------------------------

if __name__ == "__main__":
    key = jax.random.PRNGKey(0)
    pkey, ikey = jax.random.split(key)
    params = init_params(pkey)

    ids = jax.random.randint(ikey, (B, S), 0, VOCAB, dtype=jnp.int32)
    mask = jnp.ones((B, S), jnp.int32).at[1, S - 2:].set(0)   # pad last 2 toks of row 1
    token_type_ids = jnp.zeros((B, S), jnp.int32).at[:, S // 2:].set(1)

    fwd = jax.jit(bert_base_uncased_forward)
    out = jax.block_until_ready(fwd(params, ids, mask, token_type_ids))

    assert out.shape == (B, 1) and out.dtype == jnp.float32
    assert bool(jnp.all(jnp.isfinite(out)))
    print("KERNEL_OK")
</pallas_src>

<mosaic_0001>
module attributes {stable_mosaic.version = 11 : i64} {
  func.func @_linear_kernel(%arg0: i32, %arg1: i32, %arg2: i32, %arg3: memref<16x128xbf16, #tpu.memory_space<vmem>>, %arg4: memref<128x128xbf16, #tpu.memory_space<vmem>>, %arg5: memref<1x128xf32, #tpu.memory_space<vmem>>, %arg6: memref<16x128xbf16, #tpu.memory_space<vmem>>, %arg7: memref<16x128xf32, #tpu.memory_space<vmem>>) attributes {dimension_semantics = [#tpu.dimension_semantics<parallel>, #tpu.dimension_semantics<parallel>, #tpu.dimension_semantics<arbitrary>], iteration_bounds = array<i64: 1, 3, 1>, scalar_prefetch = 0 : i64, scratch_operands = 1 : i64, tpu.core_type = #tpu.core_type<tc>, window_params = [{transform_indices = @transform_0, window_bounds = array<i64: 16, 128>}, {transform_indices = @transform_1, window_bounds = array<i64: 128, 128>}, {transform_indices = @transform_2, window_bounds = array<i64: 1, 128>}, {transform_indices = @transform_3, window_bounds = array<i64: 16, 128>}]} {
    %c0_i32 = arith.constant 0 : i32
    %0 = arith.cmpi eq, %arg2, %c0_i32 : i32
    %1 = arith.extui %0 : i1 to i32
    %c0_i32_0 = arith.constant 0 : i32
    %2 = arith.cmpi ne, %1, %c0_i32_0 : i32
    scf.if %2 {
      %cst_10 = arith.constant 0.000000e+00 : f32
      %12 = vector.broadcast %cst_10 : f32 to vector<16x128xf32>
      %c0_11 = arith.constant 0 : index
      %c0_12 = arith.constant 0 : index
      %13 = vector.load %arg7[%c0_11, %c0_12] : memref<16x128xf32, #tpu.memory_space<vmem>>, vector<16x128xf32>
      tpu.vector_store %arg7[%c0_11, %c0_12], %12 {strides = array<i32>} : memref<16x128xf32, #tpu.memory_space<vmem>>, vector<16x128xf32>,
    } else {
    }
    %c0 = arith.constant 0 : index
    %c0_1 = arith.constant 0 : index
    %3 = vector.load %arg7[%c0, %c0_1] : memref<16x128xf32, #tpu.memory_space<vmem>>, vector<16x128xf32>
    %c0_2 = arith.constant 0 : index
    %c0_3 = arith.constant 0 : index
    %4 = vector.load %arg3[%c0_2, %c0_3] : memref<16x128xbf16, #tpu.memory_space<vmem>>, vector<16x128xbf16>
    %c0_4 = arith.constant 0 : index
    %c0_5 = arith.constant 0 : index
    %5 = vector.load %arg4[%c0_4, %c0_5] : memref<128x128xbf16, #tpu.memory_space<vmem>>, vector<128x128xbf16>
    %cst = arith.constant dense<0.000000e+00> : vector<16x128xf32>
    %6 = tpu.matmul %4, %5, %cst {dimension_numbers = #tpu.dot_dimension_numbers<[1], [0], [0], [1], [0, 0, 1, 1], [], []>} : vector<16x128xbf16>, vector<128x128xbf16>, vector<16x128xf32> -> vector<16x128xf32>
    %7 = arith.addf %3, %6 : vector<16x128xf32>
    %c0_6 = arith.constant 0 : index
    %c0_7 = arith.constant 0 : index
    %8 = vector.load %arg7[%c0_6, %c0_7] : memref<16x128xf32, #tpu.memory_space<vmem>>, vector<16x128xf32>
    tpu.vector_store %arg7[%c0_6, %c0_7], %7 {strides = array<i32>} : memref<16x128xf32, #tpu.memory_space<vmem>>, vector<16x128xf32>,
    %c0_i32_8 = arith.constant 0 : i32
    %9 = arith.cmpi eq, %arg2, %c0_i32_8 : i32
    %10 = arith.extui %9 : i1 to i32
    %c0_i32_9 = arith.constant 0 : i32
    %11 = arith.cmpi ne, %10, %c0_i32_9 : i32
    scf.if %11 {
      %c0_10 = arith.constant 0 : index
      %c0_11 = arith.constant 0 : index
      %12 = vector.load %arg7[%c0_10, %c0_11] : memref<16x128xf32, #tpu.memory_space<vmem>>, vector<16x128xf32>
      %c0_12 = arith.constant 0 : index
      %c0_13 = arith.constant 0 : index
      %13 = vector.load %arg5[%c0_12, %c0_13] : memref<1x128xf32, #tpu.memory_space<vmem>>, vector<1x128xf32>
      %14 = vector.broadcast %13 : vector<1x128xf32> to vector<16x128xf32>
      %15 = arith.addf %12, %14 : vector<16x128xf32>
      %16 = arith.truncf %15 : vector<16x128xf32> to vector<16x128xbf16>
      %c0_14 = arith.constant 0 : index
      %c0_15 = arith.constant 0 : index
      %17 = vector.load %arg6[%c0_14, %c0_15] : memref<16x128xbf16, #tpu.memory_space<vmem>>, vector<16x128xbf16>
      tpu.vector_store %arg6[%c0_14, %c0_15], %16 {strides = array<i32>} : memref<16x128xbf16, #tpu.memory_space<vmem>>, vector<16x128xbf16>,
    } else {
    }
    return
  }
  func.func @transform_0(%arg0: i32, %arg1: i32, %arg2: i32) -> (i32, i32) {
    %c0_i32 = arith.constant 0 : i32
    return %arg0, %arg2 : i32, i32
  }
  func.func @transform_1(%arg0: i32, %arg1: i32, %arg2: i32) -> (i32, i32) {
    %c0_i32 = arith.constant 0 : i32
    return %arg2, %arg1 : i32, i32
  }
  func.func @transform_2(%arg0: i32, %arg1: i32, %arg2: i32) -> (i32, i32) {
    %c0_i32 = arith.constant 0 : i32
    %c0_i32_0 = arith.constant 0 : i32
    return %c0_i32, %arg1 : i32, i32
  }
  func.func @transform_3(%arg0: i32, %arg1: i32, %arg2: i32) -> (i32, i32) {
    %c0_i32 = arith.constant 0 : i32
    return %arg0, %arg1 : i32, i32
  }
}

module attributes {stable_mosaic.version = 11 : i64} {
  func.func @_ln_kernel(%arg0: i32, %arg1: memref<16x128xf32, #tpu.memory_space<vmem>>, %arg2: memref<1x128xf32, #tpu.memory_space<vmem>>, %arg3: memref<1x128xf32, #tpu.memory_space<vmem>>, %arg4: memref<16x128xbf16, #tpu.memory_space<vmem>>) attributes {dimension_semantics = [#tpu.dimension_semantics<parallel>], iteration_bounds = array<i64: 1>, scalar_prefetch = 0 : i64, scratch_operands = 0 : i64, tpu.core_type = #tpu.core_type<tc>, window_params = [{transform_indices = @transform_0, window_bounds = array<i64: 16, 128>}, {pipeline_mode = #tpu.pipeline_mode<synchronous>, transform_indices = @transform_1, window_bounds = array<i64: 1, 128>}, {pipeline_mode = #tpu.pipeline_mode<synchronous>, transform_indices = @transform_2, window_bounds = array<i64: 1, 128>}, {transform_indices = @transform_3, window_bounds = array<i64: 16, 128>}]} {
    %c0 = arith.constant 0 : index
    %c0_0 = arith.constant 0 : index
    %0 = vector.load %arg1[%c0, %c0_0] : memref<16x128xf32, #tpu.memory_space<vmem>>, vector<16x128xf32>
    %c0_1 = arith.constant 0 : index
    %c0_2 = arith.constant 0 : index
    %1 = vector.load %arg2[%c0_1, %c0_2] : memref<1x128xf32, #tpu.memory_space<vmem>>, vector<1x128xf32>
    %c0_3 = arith.constant 0 : index
    %c0_4 = arith.constant 0 : index
    %2 = vector.load %arg3[%c0_3, %c0_4] : memref<1x128xf32, #tpu.memory_space<vmem>>, vector<1x128xf32>
    %cst = arith.constant dense<0.000000e+00> : vector<16xf32>
    %3 = vector.multi_reduction <add>, %0, %cst [1] : vector<16x128xf32> to vector<16xf32>
    %4 = vector.shape_cast %3 : vector<16xf32> to vector<16x1xf32>
    %cst_5 = arith.constant 1.280000e+02 : f32
    %5 = vector.broadcast %cst_5 : f32 to vector<16x1xf32>
    %6 = arith.divf %4, %5 : vector<16x1xf32>
    %7 = vector.broadcast %6 : vector<16x1xf32> to vector<16x128xf32>
    %8 = arith.subf %0, %7 : vector<16x128xf32>
    %9 = arith.mulf %8, %8 : vector<16x128xf32>
    %cst_6 = arith.constant dense<0.000000e+00> : vector<16xf32>
    %10 = vector.multi_reduction <add>, %9, %cst_6 [1] : vector<16x128xf32> to vector<16xf32>
    %11 = vector.shape_cast %10 : vector<16xf32> to vector<16x1xf32>
    %cst_7 = arith.constant 1.280000e+02 : f32
    %12 = vector.broadcast %cst_7 : f32 to vector<16x1xf32>
    %13 = arith.divf %11, %12 : vector<16x1xf32>
    %cst_8 = arith.constant 9.99999996E-13 : f32
    %14 = vector.broadcast %cst_8 : f32 to vector<16x1xf32>
    %15 = arith.addf %13, %14 : vector<16x1xf32>
    %16 = math.rsqrt %15 : vector<16x1xf32>
    %17 = vector.broadcast %16 : vector<16x1xf32> to vector<16x128xf32>
    %18 = arith.mulf %8, %17 : vector<16x128xf32>
    %19 = vector.broadcast %1 : vector<1x128xf32> to vector<16x128xf32>
    %20 = arith.mulf %18, %19 : vector<16x128xf32>
    %21 = vector.broadcast %2 : vector<1x128xf32> to vector<16x128xf32>
    %22 = arith.addf %20, %21 : vector<16x128xf32>
    %23 = arith.truncf %22 : vector<16x128xf32> to vector<16x128xbf16>
    %c0_9 = arith.constant 0 : index
    %c0_10 = arith.constant 0 : index
    %24 = vector.load %arg4[%c0_9, %c0_10] : memref<16x128xbf16, #tpu.memory_space<vmem>>, vector<16x128xbf16>
    tpu.vector_store %arg4[%c0_9, %c0_10], %23 {strides = array<i32>} : memref<16x128xbf16, #tpu.memory_space<vmem>>, vector<16x128xbf16>,
    return
  }
  func.func @transform_0(%arg0: i32) -> (i32, i32) {
    %c0_i32 = arith.constant 0 : i32
    %c0_i32_0 = arith.constant 0 : i32
    return %arg0, %c0_i32 : i32, i32
  }
  func.func @transform_1(%arg0: i32) -> (i32, i32) {
    %c0_i32 = arith.constant 0 : i32
    %c0_i32_0 = arith.constant 0 : i32
    %c0_i32_1 = arith.constant 0 : i32
    return %c0_i32, %c0_i32_0 : i32, i32
  }
  func.func @transform_2(%arg0: i32) -> (i32, i32) {
    %c0_i32 = arith.constant 0 : i32
    %c0_i32_0 = arith.constant 0 : i32
    %c0_i32_1 = arith.constant 0 : i32
    return %c0_i32, %c0_i32_0 : i32, i32
  }
  func.func @transform_3(%arg0: i32) -> (i32, i32) {
    %c0_i32 = arith.constant 0 : i32
    %c0_i32_0 = arith.constant 0 : i32
    return %arg0, %c0_i32 : i32, i32
  }
}

module attributes {stable_mosaic.version = 11 : i64} {
  func.func @_attn_proj_ln_kernel(%arg0: i32, %arg1: memref<1x8x384xbf16, #tpu.memory_space<vmem>>, %arg2: memref<1x1x8xf32, #tpu.memory_space<vmem>>, %arg3: memref<1x8x128xbf16, #tpu.memory_space<vmem>>, %arg4: memref<128x128xbf16, #tpu.memory_space<vmem>>, %arg5: memref<1x128xf32, #tpu.memory_space<vmem>>, %arg6: memref<1x128xf32, #tpu.memory_space<vmem>>, %arg7: memref<1x128xf32, #tpu.memory_space<vmem>>, %arg8: memref<1x8x128xbf16, #tpu.memory_space<vmem>>) attributes {dimension_semantics = [#tpu.dimension_semantics<parallel>], iteration_bounds = array<i64: 2>, scalar_prefetch = 0 : i64, scratch_operands = 0 : i64, tpu.core_type = #tpu.core_type<tc>, window_params = [{transform_indices = @transform_0, window_bounds = array<i64: 1, 8, 384>}, {transform_indices = @transform_1, window_bounds = array<i64: 1, 1, 8>}, {transform_indices = @transform_2, window_bounds = array<i64: 1, 8, 128>}, {pipeline_mode = #tpu.pipeline_mode<synchronous>, transform_indices = @transform_3, window_bounds = array<i64: 128, 128>}, {pipeline_mode = #tpu.pipeline_mode<synchronous>, transform_indices = @transform_4, window_bounds = array<i64: 1, 128>}, {pipeline_mode = #tpu.pipeline_mode<synchronous>, transform_indices = @transform_5, window_bounds = array<i64: 1, 128>}, {pipeline_mode = #tpu.pipeline_mode<synchronous>, transform_indices = @transform_6, window_bounds = array<i64: 1, 128>}, {transform_indices = @transform_7, window_bounds = array<i64: 1, 8, 128>}]} {
    %c0 = arith.constant 0 : index
    %c0_0 = arith.constant 0 : index
    %c0_1 = arith.constant 0 : index
    %0 = vector.load %arg1[%c0, %c0_0, %c0_1] : memref<1x8x384xbf16, #tpu.memory_space<vmem>>, vector<1x8x384xbf16>
    %1 = vector.shape_cast %0 : vector<1x8x384xbf16> to vector<8x384xbf16>
    %c0_2 = arith.constant 0 : index
    %c0_3 = arith.constant 0 : index
    %c0_4 = arith.constant 0 : index
    %2 = vector.load %arg2[%c0_2, %c0_3, %c0_4] : memref<1x1x8xf32, #tpu.memory_space<vmem>>, vector<1x1x8xf32>
    %3 = vector.shape_cast %2 : vector<1x1x8xf32> to vector<1x8xf32>
    %c0_5 = arith.constant 0 : index
    %c0_6 = arith.constant 0 : index
    %c0_7 = arith.constant 0 : index
    %4 = vector.load %arg3[%c0_5, %c0_6, %c0_7] : memref<1x8x128xbf16, #tpu.memory_space<vmem>>, vector<1x8x128xbf16>
    %5 = vector.shape_cast %4 : vector<1x8x128xbf16> to vector<8x128xbf16>
    %cst = arith.constant 0.000000e+00 : f32
    %6 = vector.broadcast %cst : f32 to vector<8x128xf32>
    %7 = vector.extract_strided_slice %1 {offsets = [0, 0], sizes = [8, 64], strides = [1, 1]} : vector<8x384xbf16> to vector<8x64xbf16>
    %8 = vector.extract_strided_slice %1 {offsets = [0, 128], sizes = [8, 64], strides = [1, 1]} : vector<8x384xbf16> to vector<8x64xbf16>
    %9 = vector.extract_strided_slice %1 {offsets = [0, 256], sizes = [8, 64], strides = [1, 1]} : vector<8x384xbf16> to vector<8x64xbf16>
    %cst_8 = arith.constant dense<0.000000e+00> : vector<8x8xf32>
    %10 = tpu.matmul %7, %8, %cst_8 {dimension_numbers = #tpu.dot_dimension_numbers<[1], [1], [0], [0], [0, 0, 1, 0], [], []>} : vector<8x64xbf16>, vector<8x64xbf16>, vector<8x8xf32> -> vector<8x8xf32>
    %cst_9 = arith.constant 1.250000e-01 : f32
    %11 = vector.broadcast %cst_9 : f32 to vector<8x8xf32>
    %12 = arith.mulf %10, %11 : vector<8x8xf32>
    %13 = vector.broadcast %3 : vector<1x8xf32> to vector<8x8xf32>
    %14 = arith.addf %12, %13 : vector<8x8xf32>
    %cst_10 = arith.constant dense<0xFF800000> : vector<8xf32>
    %15 = vector.multi_reduction <maximumf>, %14, %cst_10 [1] : vector<8x8xf32> to vector<8xf32>
    %16 = vector.shape_cast %15 : vector<8xf32> to vector<8x1xf32>
    %17 = vector.broadcast %16 : vector<8x1xf32> to vector<8x8xf32>
    %18 = arith.subf %14, %17 : vector<8x8xf32>
    %19 = math.exp %18 : vector<8x8xf32>
    %cst_11 = arith.constant dense<0.000000e+00> : vector<8xf32>
    %20 = vector.multi_reduction <add>, %19, %cst_11 [1] : vector<8x8xf32> to vector<8xf32>
    %21 = vector.shape_cast %20 : vector<8xf32> to vector<8x1xf32>
    %22 = tpu.reciprocal %21 {approx = true} : vector<8x1xf32> -> vector<8x1xf32>
    %23 = vector.broadcast %22 : vector<8x1xf32> to vector<8x8xf32>
    %24 = arith.mulf %19, %23 : vector<8x8xf32>
    %25 = arith.truncf %24 : vector<8x8xf32> to vector<8x8xbf16>
    %cst_12 = arith.constant dense<0.000000e+00> : vector<8x64xf32>
    %26 = tpu.matmul %25, %9, %cst_12 {dimension_numbers = #tpu.dot_dimension_numbers<[1], [0], [0], [1], [0, 0, 1, 1], [], []>} : vector<8x8xbf16>, vector<8x64xbf16>, vector<8x64xf32> -> vector<8x64xf32>
    %27 = arith.truncf %26 : vector<8x64xf32> to vector<8x64xbf16>
    %c0_13 = arith.constant 0 : index
    %c0_14 = arith.constant 0 : index
    %28 = vector.load %arg4[%c0_13, %c0_14] : memref<128x128xbf16, #tpu.memory_space<vmem>>, vector<64x128xbf16>
    %cst_15 = arith.constant dense<0.000000e+00> : vector<8x128xf32>
    %29 = tpu.matmul %27, %28, %cst_15 {dimension_numbers = #tpu.dot_dimension_numbers<[1], [0], [0], [1], [0, 0, 1, 1], [], []>} : vector<8x64xbf16>, vector<64x128xbf16>, vector<8x128xf32> -> vector<8x128xf32>
    %30 = arith.addf %6, %29 : vector<8x128xf32>
    %31 = vector.extract_strided_slice %1 {offsets = [0, 64], sizes = [8, 64], strides = [1, 1]} : vector<8x384xbf16> to vector<8x64xbf16>
    %32 = vector.extract_strided_slice %1 {offsets = [0, 192], sizes = [8, 64], strides = [1, 1]} : vector<8x384xbf16> to vector<8x64xbf16>
    %33 = vector.extract_strided_slice %1 {offsets = [0, 320], sizes = [8, 64], strides = [1, 1]} : vector<8x384xbf16> to vector<8x64xbf16>
    %cst_16 = arith.constant dense<0.000000e+00> : vector<8x8xf32>
    %34 = tpu.matmul %31, %32, %cst_16 {dimension_numbers = #tpu.dot_dimension_numbers<[1], [1], [0], [0], [0, 0, 1, 0], [], []>} : vector<8x64xbf16>, vector<8x64xbf16>, vector<8x8xf32> -> vector<8x8xf32>
    %cst_17 = arith.constant 1.250000e-01 : f32
    %35 = vector.broadcast %cst_17 : f32 to vector<8x8xf32>
    %36 = arith.mulf %34, %35 : vector<8x8xf32>
    %37 = vector.broadcast %3 : vector<1x8xf32> to vector<8x8xf32>
    %38 = arith.addf %36, %37 : vector<8x8xf32>
    %cst_18 = arith.constant dense<0xFF800000> : vector<8xf32>
    %39 = vector.multi_reduction <maximumf>, %38, %cst_18 [1] : vector<8x8xf32> to vector<8xf32>
    %40 = vector.shape_cast %39 : vector<8xf32> to vector<8x1xf32>
    %41 = vector.broadcast %40 : vector<8x1xf32> to vector<8x8xf32>
    %42 = arith.subf %38, %41 : vector<8x8xf32>
    %43 = math.exp %42 : vector<8x8xf32>
    %cst_19 = arith.constant dense<0.000000e+00> : vector<8xf32>
    %44 = vector.multi_reduction <add>, %43, %cst_19 [1] : vector<8x8xf32> to vector<8xf32>
    %45 = vector.shape_cast %44 : vector<8xf32> to vector<8x1xf32>
    %46 = tpu.reciprocal %45 {approx = true} : vector<8x1xf32> -> vector<8x1xf32>
    %47 = vector.broadcast %46 : vector<8x1xf32> to vector<8x8xf32>
    %48 = arith.mulf %43, %47 : vector<8x8xf32>
    %49 = arith.truncf %48 : vector<8x8xf32> to vector<8x8xbf16>
    %cst_20 = arith.constant dense<0.000000e+00> : vector<8x64xf32>
    %50 = tpu.matmul %49, %33, %cst_20 {dimension_numbers = #tpu.dot_dimension_numbers<[1], [0], [0], [1], [0, 0, 1, 1], [], []>} : vector<8x8xbf16>, vector<8x64xbf16>, vector<8x64xf32> -> vector<8x64xf32>
    %51 = arith.truncf %50 : vector<8x64xf32> to vector<8x64xbf16>
    %c64 = arith.constant 64 : index
    %c0_21 = arith.constant 0 : index
    %52 = vector.load %arg4[%c64, %c0_21] : memref<128x128xbf16, #tpu.memory_space<vmem>>, vector<64x128xbf16>
    %cst_22 = arith.constant dense<0.000000e+00> : vector<8x128xf32>
    %53 = tpu.matmul %51, %52, %cst_22 {dimension_numbers = #tpu.dot_dimension_numbers<[1], [0], [0], [1], [0, 0, 1, 1], [], []>} : vector<8x64xbf16>, vector<64x128xbf16>, vector<8x128xf32> -> vector<8x128xf32>
    %54 = arith.addf %30, %53 : vector<8x128xf32>
    %c0_23 = arith.constant 0 : index
    %c0_24 = arith.constant 0 : index
    %55 = vector.load %arg5[%c0_23, %c0_24] : memref<1x128xf32, #tpu.memory_space<vmem>>, vector<1x128xf32>
    %56 = vector.broadcast %55 : vector<1x128xf32> to vector<8x128xf32>
    %57 = arith.addf %54, %56 : vector<8x128xf32>
    %58 = arith.extf %5 : vector<8x128xbf16> to vector<8x128xf32>
    %59 = arith.addf %57, %58 : vector<8x128xf32>
    %c0_25 = arith.constant 0 : index
    %c0_26 = arith.constant 0 : index
    %60 = vector.load %arg6[%c0_25, %c0_26] : memref<1x128xf32, #tpu.memory_space<vmem>>, vector<1x128xf32>
    %c0_27 = arith.constant 0 : index
    %c0_28 = arith.constant 0 : index
    %61 = vector.load %arg7[%c0_27, %c0_28] : memref<1x128xf32, #tpu.memory_space<vmem>>, vector<1x128xf32>
    %cst_29 = arith.constant dense<0.000000e+00> : vector<8xf32>
    %62 = vector.multi_reduction <add>, %59, %cst_29 [1] : vector<8x128xf32> to vector<8xf32>
    %63 = vector.shape_cast %62 : vector<8xf32> to vector<8x1xf32>
    %cst_30 = arith.constant 1.280000e+02 : f32
    %64 = vector.broadcast %cst_30 : f32 to vector<8x1xf32>
    %65 = arith.divf %63, %64 : vector<8x1xf32>
    %66 = vector.broadcast %65 : vector<8x1xf32> to vector<8x128xf32>
    %67 = arith.subf %59, %66 : vector<8x128xf32>
    %68 = arith.mulf %67, %67 : vector<8x128xf32>
    %cst_31 = arith.constant dense<0.000000e+00> : vector<8xf32>
    %69 = vector.multi_reduction <add>, %68, %cst_31 [1] : vector<8x128xf32> to vector<8xf32>
    %70 = vector.shape_cast %69 : vector<8xf32> to vector<8x1xf32>
    %cst_32 = arith.constant 1.280000e+02 : f32
    %71 = vector.broadcast %cst_32 : f32 to vector<8x1xf32>
    %72 = arith.divf %70, %71 : vector<8x1xf32>
    %cst_33 = arith.constant 9.99999996E-13 : f32
    %73 = vector.broadcast %cst_33 : f32 to vector<8x1xf32>
    %74 = arith.addf %72, %73 : vector<8x1xf32>
    %75 = math.rsqrt %74 : vector<8x1xf32>
    %76 = vector.broadcast %75 : vector<8x1xf32> to vector<8x128xf32>
    %77 = arith.mulf %67, %76 : vector<8x128xf32>
    %78 = vector.broadcast %60 : vector<1x128xf32> to vector<8x128xf32>
    %79 = arith.mulf %77, %78 : vector<8x128xf32>
    %80 = vector.broadcast %61 : vector<1x128xf32> to vector<8x128xf32>
    %81 = arith.addf %79, %80 : vector<8x128xf32>
    %82 = arith.truncf %81 : vector<8x128xf32> to vector<8x128xbf16>
    %c0_34 = arith.constant 0 : index
    %c0_35 = arith.constant 0 : index
    %c0_36 = arith.constant 0 : index
    %83 = vector.load %arg8[%c0_34, %c0_35, %c0_36] : memref<1x8x128xbf16, #tpu.memory_space<vmem>>, vector<1x8x128xbf16>
    %84 = vector.shape_cast %83 : vector<1x8x128xbf16> to vector<8x128xbf16>
    %85 = vector.shape_cast %82 : vector<8x128xbf16> to vector<1x8x128xbf16>
    tpu.vector_store %arg8[%c0_34, %c0_35, %c0_36], %85 {strides = array<i32>} : memref<1x8x128xbf16, #tpu.memory_space<vmem>>, vector<1x8x128xbf16>,
    return
  }
  func.func @transform_0(%arg0: i32) -> (i32, i32, i32) {
    %c0_i32 = arith.constant 0 : i32
    %c0_i32_0 = arith.constant 0 : i32
    %c0_i32_1 = arith.constant 0 : i32
    return %arg0, %c0_i32, %c0_i32_0 : i32, i32, i32
  }
  func.func @transform_1(%arg0: i32) -> (i32, i32, i32) {
    %c0_i32 = arith.constant 0 : i32
    %c0_i32_0 = arith.constant 0 : i32
    %c0_i32_1 = arith.constant 0 : i32
    return %arg0, %c0_i32, %c0_i32_0 : i32, i32, i32
  }
  func.func @transform_2(%arg0: i32) -> (i32, i32, i32) {
    %c0_i32 = arith.constant 0 : i32
    %c0_i32_0 = arith.constant 0 : i32
    %c0_i32_1 = arith.constant 0 : i32
    return %arg0, %c0_i32, %c0_i32_0 : i32, i32, i32
  }
  func.func @transform_3(%arg0: i32) -> (i32, i32) {
    %c0_i32 = arith.constant 0 : i32
    %c0_i32_0 = arith.constant 0 : i32
    %c0_i32_1 = arith.constant 0 : i32
    return %c0_i32, %c0_i32_0 : i32, i32
  }
  func.func @transform_4(%arg0: i32) -> (i32, i32) {
    %c0_i32 = arith.constant 0 : i32
    %c0_i32_0 = arith.constant 0 : i32
    %c0_i32_1 = arith.constant 0 : i32
    return %c0_i32, %c0_i32_0 : i32, i32
  }
  func.func @transform_5(%arg0: i32) -> (i32, i32) {
    %c0_i32 = arith.constant 0 : i32
    %c0_i32_0 = arith.constant 0 : i32
    %c0_i32_1 = arith.constant 0 : i32
    return %c0_i32, %c0_i32_0 : i32, i32
  }
  func.func @transform_6(%arg0: i32) -> (i32, i32) {
    %c0_i32 = arith.constant 0 : i32
    %c0_i32_0 = arith.constant 0 : i32
    %c0_i32_1 = arith.constant 0 : i32
    return %c0_i32, %c0_i32_0 : i32, i32
  }
  func.func @transform_7(%arg0: i32) -> (i32, i32, i32) {
    %c0_i32 = arith.constant 0 : i32
    %c0_i32_0 = arith.constant 0 : i32
    %c0_i32_1 = arith.constant 0 : i32
    return %arg0, %c0_i32, %c0_i32_0 : i32, i32, i32
  }
}

module attributes {stable_mosaic.version = 11 : i64} {
  func.func @_ffn_res_ln_kernel(%arg0: i32, %arg1: memref<16x128xbf16, #tpu.memory_space<vmem>>, %arg2: memref<128x256xbf16, #tpu.memory_space<vmem>>, %arg3: memref<1x256xf32, #tpu.memory_space<vmem>>, %arg4: memref<256x128xbf16, #tpu.memory_space<vmem>>, %arg5: memref<1x128xf32, #tpu.memory_space<vmem>>, %arg6: memref<1x128xf32, #tpu.memory_space<vmem>>, %arg7: memref<1x128xf32, #tpu.memory_space<vmem>>, %arg8: memref<16x128xbf16, #tpu.memory_space<vmem>>) attributes {dimension_semantics = [#tpu.dimension_semantics<parallel>], iteration_bounds = array<i64: 1>, scalar_prefetch = 0 : i64, scratch_operands = 0 : i64, tpu.core_type = #tpu.core_type<tc>, window_params = [{transform_indices = @transform_0, window_bounds = array<i64: 16, 128>}, {pipeline_mode = #tpu.pipeline_mode<synchronous>, transform_indices = @transform_1, window_bounds = array<i64: 128, 256>}, {pipeline_mode = #tpu.pipeline_mode<synchronous>, transform_indices = @transform_2, window_bounds = array<i64: 1, 256>}, {pipeline_mode = #tpu.pipeline_mode<synchronous>, transform_indices = @transform_3, window_bounds = array<i64: 256, 128>}, {pipeline_mode = #tpu.pipeline_mode<synchronous>, transform_indices = @transform_4, window_bounds = array<i64: 1, 128>}, {pipeline_mode = #tpu.pipeline_mode<synchronous>, transform_indices = @transform_5, window_bounds = array<i64: 1, 128>}, {pipeline_mode = #tpu.pipeline_mode<synchronous>, transform_indices = @transform_6, window_bounds = array<i64: 1, 128>}, {transform_indices = @transform_7, window_bounds = array<i64: 16, 128>}]} {
    %c0 = arith.constant 0 : index
    %c0_0 = arith.constant 0 : index
    %0 = vector.load %arg1[%c0, %c0_0] : memref<16x128xbf16, #tpu.memory_space<vmem>>, vector<16x128xbf16>
    %c0_1 = arith.constant 0 : index
    %c0_2 = arith.constant 0 : index
    %1 = vector.load %arg2[%c0_1, %c0_2] : memref<128x256xbf16, #tpu.memory_space<vmem>>, vector<128x256xbf16>
    %cst = arith.constant dense<0.000000e+00> : vector<16x256xf32>
    %2 = tpu.matmul %0, %1, %cst {dimension_numbers = #tpu.dot_dimension_numbers<[1], [0], [0], [1], [0, 0, 1, 1], [], []>} : vector<16x128xbf16>, vector<128x256xbf16>, vector<16x256xf32> -> vector<16x256xf32>
    %c0_3 = arith.constant 0 : index
    %c0_4 = arith.constant 0 : index
    %3 = vector.load %arg3[%c0_3, %c0_4] : memref<1x256xf32, #tpu.memory_space<vmem>>, vector<1x256xf32>
    %4 = vector.broadcast %3 : vector<1x256xf32> to vector<16x256xf32>
    %5 = arith.addf %2, %4 : vector<16x256xf32>
    %cst_5 = arith.constant 5.000000e-01 : f32
    %6 = vector.broadcast %cst_5 : f32 to vector<16x256xf32>
    %7 = arith.mulf %6, %5 : vector<16x256xf32>
    %cst_6 = arith.constant 4.471500e-02 : f32
    %8 = vector.broadcast %cst_6 : f32 to vector<16x256xf32>
    %9 = arith.mulf %8, %5 : vector<16x256xf32>
    %10 = arith.mulf %9, %5 : vector<16x256xf32>
    %11 = arith.mulf %10, %5 : vector<16x256xf32>
    %12 = arith.addf %5, %11 : vector<16x256xf32>
    %cst_7 = arith.constant 0.797884583 : f32
    %13 = vector.broadcast %cst_7 : f32 to vector<16x256xf32>
    %14 = arith.mulf %13, %12 : vector<16x256xf32>
    %15 = math.tanh %14 : vector<16x256xf32>
    %cst_8 = arith.constant 1.000000e+00 : f32
    %16 = vector.broadcast %cst_8 : f32 to vector<16x256xf32>
    %17 = arith.addf %16, %15 : vector<16x256xf32>
    %18 = arith.mulf %7, %17 : vector<16x256xf32>
    %19 = arith.truncf %18 : vector<16x256xf32> to vector<16x256xbf16>
    %c0_9 = arith.constant 0 : index
    %c0_10 = arith.constant 0 : index
    %20 = vector.load %arg4[%c0_9, %c0_10] : memref<256x128xbf16, #tpu.memory_space<vmem>>, vector<256x128xbf16>
    %cst_11 = arith.constant dense<0.000000e+00> : vector<16x128xf32>
    %21 = tpu.matmul %19, %20, %cst_11 {dimension_numbers = #tpu.dot_dimension_numbers<[1], [0], [0], [1], [0, 0, 1, 1], [], []>} : vector<16x256xbf16>, vector<256x128xbf16>, vector<16x128xf32> -> vector<16x128xf32>
    %c0_12 = arith.constant 0 : index
    %c0_13 = arith.constant 0 : index
    %22 = vector.load %arg5[%c0_12, %c0_13] : memref<1x128xf32, #tpu.memory_space<vmem>>, vector<1x128xf32>
    %23 = vector.broadcast %22 : vector<1x128xf32> to vector<16x128xf32>
    %24 = arith.addf %21, %23 : vector<16x128xf32>
    %25 = arith.extf %0 : vector<16x128xbf16> to vector<16x128xf32>
    %26 = arith.addf %24, %25 : vector<16x128xf32>
    %c0_14 = arith.constant 0 : index
    %c0_15 = arith.constant 0 : index
    %27 = vector.load %arg6[%c0_14, %c0_15] : memref<1x128xf32, #tpu.memory_space<vmem>>, vector<1x128xf32>
    %c0_16 = arith.constant 0 : index
    %c0_17 = arith.constant 0 : index
    %28 = vector.load %arg7[%c0_16, %c0_17] : memref<1x128xf32, #tpu.memory_space<vmem>>, vector<1x128xf32>
    %cst_18 = arith.constant dense<0.000000e+00> : vector<16xf32>
    %29 = vector.multi_reduction <add>, %26, %cst_18 [1] : vector<16x128xf32> to vector<16xf32>
    %30 = vector.shape_cast %29 : vector<16xf32> to vector<16x1xf32>
    %cst_19 = arith.constant 1.280000e+02 : f32
    %31 = vector.broadcast %cst_19 : f32 to vector<16x1xf32>
    %32 = arith.divf %30, %31 : vector<16x1xf32>
    %33 = vector.broadcast %32 : vector<16x1xf32> to vector<16x128xf32>
    %34 = arith.subf %26, %33 : vector<16x128xf32>
    %35 = arith.mulf %34, %34 : vector<16x128xf32>
    %cst_20 = arith.constant dense<0.000000e+00> : vector<16xf32>
    %36 = vector.multi_reduction <add>, %35, %cst_20 [1] : vector<16x128xf32> to vector<16xf32>
    %37 = vector.shape_cast %36 : vector<16xf32> to vector<16x1xf32>
    %cst_21 = arith.constant 1.280000e+02 : f32
    %38 = vector.broadcast %cst_21 : f32 to vector<16x1xf32>
    %39 = arith.divf %37, %38 : vector<16x1xf32>
    %cst_22 = arith.constant 9.99999996E-13 : f32
    %40 = vector.broadcast %cst_22 : f32 to vector<16x1xf32>
    %41 = arith.addf %39, %40 : vector<16x1xf32>
    %42 = math.rsqrt %41 : vector<16x1xf32>
    %43 = vector.broadcast %42 : vector<16x1xf32> to vector<16x128xf32>
    %44 = arith.mulf %34, %43 : vector<16x128xf32>
    %45 = vector.broadcast %27 : vector<1x128xf32> to vector<16x128xf32>
    %46 = arith.mulf %44, %45 : vector<16x128xf32>
    %47 = vector.broadcast %28 : vector<1x128xf32> to vector<16x128xf32>
    %48 = arith.addf %46, %47 : vector<16x128xf32>
    %49 = arith.truncf %48 : vector<16x128xf32> to vector<16x128xbf16>
    %c0_23 = arith.constant 0 : index
    %c0_24 = arith.constant 0 : index
    %50 = vector.load %arg8[%c0_23, %c0_24] : memref<16x128xbf16, #tpu.memory_space<vmem>>, vector<16x128xbf16>
    tpu.vector_store %arg8[%c0_23, %c0_24], %49 {strides = array<i32>} : memref<16x128xbf16, #tpu.memory_space<vmem>>, vector<16x128xbf16>,
    return
  }
  func.func @transform_0(%arg0: i32) -> (i32, i32) {
    %c0_i32 = arith.constant 0 : i32
    %c0_i32_0 = arith.constant 0 : i32
    return %arg0, %c0_i32 : i32, i32
  }
  func.func @transform_1(%arg0: i32) -> (i32, i32) {
    %c0_i32 = arith.constant 0 : i32
    %c0_i32_0 = arith.constant 0 : i32
    %c0_i32_1 = arith.constant 0 : i32
    return %c0_i32, %c0_i32_0 : i32, i32
  }
  func.func @transform_2(%arg0: i32) -> (i32, i32) {
    %c0_i32 = arith.constant 0 : i32
    %c0_i32_0 = arith.constant 0 : i32
    %c0_i32_1 = arith.constant 0 : i32
    return %c0_i32, %c0_i32_0 : i32, i32
  }
  func.func @transform_3(%arg0: i32) -> (i32, i32) {
    %c0_i32 = arith.constant 0 : i32
    %c0_i32_0 = arith.constant 0 : i32
    %c0_i32_1 = arith.constant 0 : i32
    return %c0_i32, %c0_i32_0 : i32, i32
  }
  func.func @transform_4(%arg0: i32) -> (i32, i32) {
    %c0_i32 = arith.constant 0 : i32
    %c0_i32_0 = arith.constant 0 : i32
    %c0_i32_1 = arith.constant 0 : i32
    return %c0_i32, %c0_i32_0 : i32, i32
  }
  func.func @transform_5(%arg0: i32) -> (i32, i32) {
    %c0_i32 = arith.constant 0 : i32
    %c0_i32_0 = arith.constant 0 : i32
    %c0_i32_1 = arith.constant 0 : i32
    return %c0_i32, %c0_i32_0 : i32, i32
  }
  func.func @transform_6(%arg0: i32) -> (i32, i32) {
    %c0_i32 = arith.constant 0 : i32
    %c0_i32_0 = arith.constant 0 : i32
    %c0_i32_1 = arith.constant 0 : i32
    return %c0_i32, %c0_i32_0 : i32, i32
  }
  func.func @transform_7(%arg0: i32) -> (i32, i32) {
    %c0_i32 = arith.constant 0 : i32
    %c0_i32_0 = arith.constant 0 : i32
    return %arg0, %c0_i32 : i32, i32
  }
}

module attributes {stable_mosaic.version = 11 : i64} {
  func.func @_pool_fc_kernel(%arg0: i32, %arg1: memref<2x128xbf16, #tpu.memory_space<vmem>>, %arg2: memref<128x128xbf16, #tpu.memory_space<vmem>>, %arg3: memref<1x128xf32, #tpu.memory_space<vmem>>, %arg4: memref<1x128xf32, #tpu.memory_space<vmem>>, %arg5: memref<1x1xf32, #tpu.memory_space<vmem>>, %arg6: memref<2x1xf32, #tpu.memory_space<vmem>>) attributes {dimension_semantics = [#tpu.dimension_semantics<arbitrary>], iteration_bounds = array<i64: 1>, scalar_prefetch = 0 : i64, scratch_operands = 0 : i64, tpu.core_type = #tpu.core_type<tc>, window_params = [{pipeline_mode = #tpu.pipeline_mode<synchronous>, transform_indices = @transform_0, window_bounds = array<i64: 2, 128>}, {pipeline_mode = #tpu.pipeline_mode<synchronous>, transform_indices = @transform_1, window_bounds = array<i64: 128, 128>}, {pipeline_mode = #tpu.pipeline_mode<synchronous>, transform_indices = @transform_2, window_bounds = array<i64: 1, 128>}, {pipeline_mode = #tpu.pipeline_mode<synchronous>, transform_indices = @transform_3, window_bounds = array<i64: 1, 128>}, {pipeline_mode = #tpu.pipeline_mode<synchronous>, transform_indices = @transform_4, window_bounds = array<i64: 1, 1>}, {pipeline_mode = #tpu.pipeline_mode<synchronous>, transform_indices = @transform_5, window_bounds = array<i64: 2, 1>}]} {
    %c0 = arith.constant 0 : index
    %c0_0 = arith.constant 0 : index
    %0 = vector.load %arg1[%c0, %c0_0] : memref<2x128xbf16, #tpu.memory_space<vmem>>, vector<2x128xbf16>
    %c0_1 = arith.constant 0 : index
    %c0_2 = arith.constant 0 : index
    %1 = vector.load %arg2[%c0_1, %c0_2] : memref<128x128xbf16, #tpu.memory_space<vmem>>, vector<128x128xbf16>
    %cst = arith.constant dense<0.000000e+00> : vector<2x128xf32>
    %2 = tpu.matmul %0, %1, %cst {dimension_numbers = #tpu.dot_dimension_numbers<[1], [0], [0], [1], [0, 0, 1, 1], [], []>} : vector<2x128xbf16>, vector<128x128xbf16>, vector<2x128xf32> -> vector<2x128xf32>
    %c0_3 = arith.constant 0 : index
    %c0_4 = arith.constant 0 : index
    %3 = vector.load %arg3[%c0_3, %c0_4] : memref<1x128xf32, #tpu.memory_space<vmem>>, vector<1x128xf32>
    %4 = vector.broadcast %3 : vector<1x128xf32> to vector<2x128xf32>
    %5 = arith.addf %2, %4 : vector<2x128xf32>
    %6 = math.tanh %5 : vector<2x128xf32>
    %c0_5 = arith.constant 0 : index
    %c0_6 = arith.constant 0 : index
    %7 = vector.load %arg4[%c0_5, %c0_6] : memref<1x128xf32, #tpu.memory_space<vmem>>, vector<1x128xf32>
    %8 = vector.broadcast %7 : vector<1x128xf32> to vector<2x128xf32>
    %9 = arith.mulf %6, %8 : vector<2x128xf32>
    %cst_7 = arith.constant dense<0.000000e+00> : vector<2xf32>
    %10 = vector.multi_reduction <add>, %9, %cst_7 [1] : vector<2x128xf32> to vector<2xf32>
    %11 = vector.shape_cast %10 : vector<2xf32> to vector<2x1xf32>
    %c0_8 = arith.constant 0 : index
    %c0_9 = arith.constant 0 : index
    %12 = vector.load %arg5[%c0_8, %c0_9] : memref<1x1xf32, #tpu.memory_space<vmem>>, vector<1x1xf32>
    %13 = vector.broadcast %12 : vector<1x1xf32> to vector<2x1xf32>
    %14 = arith.addf %11, %13 : vector<2x1xf32>
    %c0_10 = arith.constant 0 : index
    %c0_11 = arith.constant 0 : index
    %15 = vector.load %arg6[%c0_10, %c0_11] : memref<2x1xf32, #tpu.memory_space<vmem>>, vector<2x1xf32>
    tpu.vector_store %arg6[%c0_10, %c0_11], %14 {strides = array<i32>} : memref<2x1xf32, #tpu.memory_space<vmem>>, vector<2x1xf32>,
    return
  }
  func.func @transform_0(%arg0: i32) -> (i32, i32) {
    %c0_i32 = arith.constant 0 : i32
    %c0_i32_0 = arith.constant 0 : i32
    %c0_i32_1 = arith.constant 0 : i32
    return %c0_i32, %c0_i32_0 : i32, i32
  }
  func.func @transform_1(%arg0: i32) -> (i32, i32) {
    %c0_i32 = arith.constant 0 : i32
    %c0_i32_0 = arith.constant 0 : i32
    %c0_i32_1 = arith.constant 0 : i32
    return %c0_i32, %c0_i32_0 : i32, i32
  }
  func.func @transform_2(%arg0: i32) -> (i32, i32) {
    %c0_i32 = arith.constant 0 : i32
    %c0_i32_0 = arith.constant 0 : i32
    %c0_i32_1 = arith.constant 0 : i32
    return %c0_i32, %c0_i32_0 : i32, i32
  }
  func.func @transform_3(%arg0: i32) -> (i32, i32) {
    %c0_i32 = arith.constant 0 : i32
    %c0_i32_0 = arith.constant 0 : i32
    %c0_i32_1 = arith.constant 0 : i32
    return %c0_i32, %c0_i32_0 : i32, i32
  }
  func.func @transform_4(%arg0: i32) -> (i32, i32) {
    %c0_i32 = arith.constant 0 : i32
    %c0_i32_0 = arith.constant 0 : i32
    %c0_i32_1 = arith.constant 0 : i32
    return %c0_i32, %c0_i32_0 : i32, i32
  }
  func.func @transform_5(%arg0: i32) -> (i32, i32) {
    %c0_i32 = arith.constant 0 : i32
    %c0_i32_0 = arith.constant 0 : i32
    %c0_i32_1 = arith.constant 0 : i32
    return %c0_i32, %c0_i32_0 : i32, i32
  }
}

</mosaic_0001>

<bundles_post_ra>
// kernel: bert_base_uncased_forward.8
= control target key start
LH: loop header
LB: loop body
LE: loop exit
PB: predicated region body
PF: predicated region fallthrough
CT: control target
= control target key end

     0   :  { %s121_s0 = inlined_call_operand.vmem [shape: f32[16,128], index: 0, kind: input, shape index: {}]   ;;  %s122_s1 = inlined_call_operand.vmem [shape: f32[1,128], index: 1, kind: input, shape index: {}]   ;;  %s123_s2 = inlined_call_operand.vmem [shape: f32[1,128], index: 2, kind: input, shape index: {}]   ;;  %s124_s3 = inlined_call_operand.vmem [shape: bf16[16,128], index: 3, kind: output, shape index: {}]  }
   0x1   :  { %v14_v0 = vld [vmem:[%s121_s0] sm:$0xff]  ;;  %v15_v1 = vld [vmem:[%s121_s0 + $0x8] sm:$0xff] }
   0x2   :  { %18 = vadd.xlane.f32.xlu0 %v14_v0  ;;  %v71_v18 = vld [vmem:[%s122_s1] ss:$0 sm:$0xff] }
   0x3   :  { %v72_v22 = vld [vmem:[%s123_s2] ss:$0 sm:$0xff] }
   0x6   :  { %20 = vadd.xlane.f32.xlu0 %v15_v1 }
  0x8f   :  { %v19_v2 = vpop.xlane.xlu0 %18 }
  0x90   :  { %v23_v3 = vmul.f32 0.0078125, %v19_v2 }
  0x92   :  { %v25_v4 = vsub.f32 %v14_v0, %v23_v3 }
  0x93   :  { %v21_v5 = vpop.xlane.xlu0 %20 }
  0x94   :  { %v24_v6 = vmul.f32 0.0078125, %v21_v5  ;;  %v27_v7 = vmul.f32 %v25_v4, %v25_v4 }
  0x96   :  { %v26_v8 = vsub.f32 %v15_v1, %v24_v6  ;;  %29 = vadd.xlane.f32.xlu1 %v27_v7 }
  0x98   :  { %v28_v9 = vmul.f32 %v26_v8, %v26_v8 }
  0x9a   :  { %31 = vadd.xlane.f32.xlu1 %v28_v9 }
 0x123   :  { %v30_v10 = vpop.xlane.xlu1 %29 }
 0x124   :  { %v33_v11 = vmul.f32 0.0078125, %v30_v10 }
 0x126   :  { %v35_v12 = vadd.f32 1e-12, %v33_v11 }
 0x127   :  { %v32_v13 = vpop.xlane.xlu1 %31 }
 0x128   :  { %82 = vrsqrt.f32 %v35_v12  ;;  %v34_v14 = vmul.f32 0.0078125, %v32_v13 }
 0x12a   :  { %v36_v15 = vadd.f32 1e-12, %v34_v14 }
 0x12c   :  { %84 = vrsqrt.f32 %v36_v15 }
 0x132   :  { %v83_v16 = vpop.eup %82 }
 0x133   :  { %v39_v17 = vmul.f32 %v83_v16, %v25_v4 }
 0x135   :  { %v47_v20 = vmul.f32 %v71_v18, %v39_v17 }
 0x136   :  { %v85_v19 = vpop.eup %84 }
 0x137   :  { %v40_v21 = vmul.f32 %v85_v19, %v26_v8  ;;  %v55_v24 = vadd.f32 %v72_v22, %v47_v20 }
 0x139   :  { %v48_v23 = vmul.f32 %v71_v18, %v40_v21 }
 0x13b   :  { %v56_v25 = vadd.f32 %v72_v22, %v48_v23 }
 0x13d   :  { %v80_v26 = vpack.c.bf16 %v56_v25, %v55_v24 }
 0x13f   :  { %81 = vst [vmem:[%s124_s3] sm:$0xff] %v80_v26  }

// kernel: bert_base_uncased_forward.9
= control target key start
LH: loop header
LB: loop body
LE: loop exit
PB: predicated region body
PF: predicated region fallthrough
CT: control target
= control target key end

     0   :  { %s820_s12 = smov 0   ;;  %s822_s13 = smov 0   ;;  %s922_s0 = inlined_call_operand.vmem [shape: bf16[16,128], index: 0, kind: input, shape index: {}]   ;;  %s923_s1 = inlined_call_operand.vmem [shape: bf16[128,384], index: 1, kind: input, shape index: {}]   ;;  %s924_s2 = inlined_call_operand.vmem [shape: f32[1,384], index: 2, kind: input, shape index: {}]   ;;  %s925_s3 = inlined_call_operand.vmem [shape: bf16[16,384], index: 3, kind: output, shape index: {}]  }
   0x1   :  { %s824_s14 = smov 0   ;;  %s826_s15 = smov 0  }
   0x2   :  { %s828_s16 = smov 0  }
   0x3 LB: > { %s28_s17 = sadd.s32 1, %s792_s15  ;;  %s645_s18 = sadd.s32 4294967295, %s796_s16   ;;  %s796_s16 = sphi %s828_s16, %s13_s16   ;;  %s792_s15 = sphi %s826_s15, %s930_s15   ;;  %s788_s14 = sphi %s824_s14, %s929_s14   ;;  %s784_s13 = sphi %s822_s13, %s928_s13   ;;  %s780_s12 = sphi %s820_s12, %s927_s12  }
   0x4   : > { %p30_p0 = scmp.ge.s32.totalorder %s28_s17, 3  ;;  %p76_p1 = scmp.ne.s32.totalorder %s784_s13, %s780_s12 }
   0x5   : > { %p77_p2 = scmp.eq.s32.totalorder %s796_s16, 0  ;;  %p134_p4 = scmp.eq.s32.totalorder %s645_s18, 2 }
   0x6   : > { %s932_s17 = smov (%p30_p0, %s28_s17), 0  ;;  %s69_s20 = sadd.s32 1, %s784_s13 }
   0x7   : > { %p78_p3 = por %p77_p2, %p76_p1  ;;  %s65_s19 = ssub.s32 %s792_s15, %s932_s17 }
   0x8   : > { %p67_p5 = scmp.eq.s32.totalorder %s65_s19, 0  ;;  %p855_p6 = por %p134_p4, %p76_p1 }
   0x9   : > { %p649_p7 = scmp.ge.s32.totalorder %s796_s16, 3 }
   0xa   : > { %s860_s22 = scalar_select %p67_p5, %s784_s13, %s69_s20  }
   0xb   : > { %168 = sbr.rel (%p649_p7) target bundleno = 32 (0x20), region = 20 }
  0x12   : > { %171 = sbr.rel (!%p78_p3) target bundleno = 32 (0x20), region = 24  ;;  %s173_s23 = sand.u32 (%p78_p3), 1, %s784_s13  }
  0x13   : > { %s651_s24 = sshll.u32 (%p78_p3), %s792_s15, 2  ;;  %s650_s25 = sshll.u32 (%p78_p3), %s173_s23, 6 }
  0x14   : > { %s868_s28 = scalar_lea.vmem (%p78_p3), %s923_s1, %s651_s24  ;;  %s175_s29 = scalar_lea.vmem (%p78_p3), [#allocation3], %s650_s25 }
  0x15   : > { %v196_v0 = vld [vmem:[%s868_s28] sm:$0xf] (%p78_p3)  ;;  %v198_v1 = vld [vmem:[%s868_s28 + $0xc] sm:$0xf] (%p78_p3)  ;;  %v200_v2 = vld [vmem:[%s868_s28 + $0x18] sm:$0xf] (%p78_p3) }
  0x16   : > { %197 = vst [vmem:[%s175_s29] sm:$0xf] (%p78_p3), %v196_v0  ;;  %199 = vst [vmem:[%s175_s29 + $0x4] sm:$0xf] (%p78_p3), %v198_v1  ;;  %v202_v3 = vld [vmem:[%s868_s28 + $0x24] sm:$0xf] (%p78_p3) }
  0x17   : > { %v204_v4 = vld [vmem:[%s868_s28 + $0x30] sm:$0xf] (%p78_p3)  ;;  %201 = vst [vmem:[%s175_s29 + $0x8] sm:$0xf] (%p78_p3), %v200_v2  ;;  %203 = vst [vmem:[%s175_s29 + $0xc] sm:$0xf] (%p78_p3), %v202_v3 }
  0x18   : > { %205 = vst [vmem:[%s175_s29 + $0x10] sm:$0xf] (%p78_p3), %v204_v4  ;;  %v206_v5 = vld [vmem:[%s868_s28 + $0x3c] sm:$0xf] (%p78_p3)  ;;  %v208_v6 = vld [vmem:[%s868_s28 + $0x48] sm:$0xf] (%p78_p3) }
  0x19   : > { %v210_v7 = vld [vmem:[%s868_s28 + $0x54] sm:$0xf]  ;;  %207 = vst [vmem:[%s175_s29 + $0x14] sm:$0xf] %v206_v5  ;;  %209 = vst [vmem:[%s175_s29 + $0x18] sm:$0xf] %v208_v6 }
  0x1a   : > { %211 = vst [vmem:[%s175_s29 + $0x1c] sm:$0xf] %v210_v7  ;;  %v212_v8 = vld [vmem:[%s868_s28 + $0x60] sm:$0xf]  ;;  %v214_v9 = vld [vmem:[%s868_s28 + $0x6c] sm:$0xf] }
  0x1b   : > { %v216_v10 = vld [vmem:[%s868_s28 + $0x78] sm:$0xf]  ;;  %213 = vst [vmem:[%s175_s29 + $0x20] sm:$0xf] %v212_v8  ;;  %215 = vst [vmem:[%s175_s29 + $0x24] sm:$0xf] %v214_v9 }
  0x1c   : > { %217 = vst [vmem:[%s175_s29 + $0x28] sm:$0xf] %v216_v10  ;;  %v218_v11 = vld [vmem:[%s868_s28 + $0x84] sm:$0xf]  ;;  %v220_v12 = vld [vmem:[%s868_s28 + $0x90] sm:$0xf] }
  0x1d   : > { %v222_v13 = vld [vmem:[%s868_s28 + $0x9c] sm:$0xf]  ;;  %219 = vst [vmem:[%s175_s29 + $0x2c] sm:$0xf] %v218_v11  ;;  %221 = vst [vmem:[%s175_s29 + $0x30] sm:$0xf] %v220_v12 }
  0x1e   : > { %223 = vst [vmem:[%s175_s29 + $0x34] sm:$0xf] %v222_v13  ;;  %v224_v14 = vld [vmem:[%s868_s28 + $0xa8] sm:$0xf]  ;;  %v226_v15 = vld [vmem:[%s868_s28 + $0xb4] sm:$0xf] }
  0x1f   : > { %225 = vst [vmem:[%s175_s29 + $0x38] sm:$0xf] %v224_v14  ;;  %227 = vst [vmem:[%s175_s29 + $0x3c] sm:$0xf] %v226_v15 }
  0x20 PF: > { %p652_p8 = scmp.ge.s32.totalorder %s796_s16, 1  ;;  %p287_p9 = scmp.lt.s32.totalorder %s796_s16, 4 }
  0x22   : > { %p288_p10 = pnand %p652_p8, %p287_p9 }
  0x23   : > { %s294_s30 = sand.u32 (!%p288_p10), 1, %s780_s12   ;;  %v798_v16 = vmov (!%p288_p10), 0.0   ;;  %vm799_vm0 = vmmov (!%p288_p10), 0   ;;  %v757_v25 = vld [vmem:[%s922_s0] sm:$0xff] (!%p288_p10)   ;;  %p337_p11 = scmp.lt.s32.totalorder (!%p288_p10), %s788_s14, 2 }
  0x24   : > { %291 = sbr.rel (%p288_p10) target bundleno = 297 (0x129), region = 69  ;;  %687 = vmatprep.subr.bf16.mxu0 (!%p288_p10), %v798_v16  ;;  %s653_s4 = sshll.u32 (!%p288_p10), %s294_s30, 6  ;;  %703 = vmatprep.mubr.msk.bf16.mxu0 (!%p288_p10), %vm799_vm0, %v798_v16 }
  0x25   : > { %s296_s5 = scalar_lea.vmem (!%p288_p10), [#allocation3], %s653_s4  ;;  %s654_s18 = sshll.u32 (!%p288_p10), %s294_s30, 3 }
  0x26   : > { %v749_v17 = vld [vmem:[%s296_s5] sm:$0xff] (!%p288_p10)   ;;  %v750_v18 = vld [vmem:[%s296_s5 + $0x8] sm:$0xff] (!%p288_p10)   ;;  %v751_v19 = vld [vmem:[%s296_s5 + $0x10] sm:$0xff] (!%p288_p10)   ;;  %s326_s19 = scalar_lea.vmem (!%p288_p10), [#allocation4], %s654_s18 }
  0x27   : > { %688 = vmatpush3.bf16.msra.mxu0 (!%p288_p10), %v749_v17  ;;  %v752_v20 = vld [vmem:[%s296_s5 + $0x18] sm:$0xff] (!%p288_p10)   ;;  %v753_v21 = vld [vmem:[%s296_s5 + $0x20] sm:$0xff] (!%p288_p10)   ;;  %v754_v22 = vld [vmem:[%s296_s5 + $0x28] sm:$0xff] (!%p288_p10)  }
  0x28   : > { %689 = vmatprep.subr.bf16.mxu0 (!%p288_p10), %v798_v16  ;;  %v755_v23 = vld [vmem:[%s296_s5 + $0x30] sm:$0xff] (!%p288_p10)   ;;  %v756_v24 = vld [vmem:[%s296_s5 + $0x38] sm:$0xff] (!%p288_p10)  }
  0x2b   : > { %690 = vmatpush3.bf16.msra.mxu0 %v750_v18  ;;  %s338_s8 = scalar_select %p337_p11, %s788_s14, 2 }
  0x2c   : > { %691 = vmatprep.subr.bf16.mxu0 %v798_v16  ;;  %s668_s20 = sshll.u32 (%p855_p6), %s788_s14, 2 }
  0x2d   : > { %s339_s11 = scalar_lea.vmem %s924_s2, %s338_s8  ;;  %s502_s25 = scalar_lea.vmem (%p855_p6), %s925_s3, %s668_s20 }
  0x2e   : > { %v664_v27 = vld [vmem:[%s339_s11] ss:$0 sm:$0xff] }
  0x2f   : > { %692 = vmatpush3.bf16.msra.mxu0 %v751_v19 }
  0x30   : > { %693 = vmatprep.subr.bf16.mxu0 %v798_v16 }
  0x33   : > { %694 = vmatpush3.bf16.msra.mxu0 %v752_v20 }
  0x34   : > { %695 = vmatprep.subr.bf16.mxu0 %v798_v16 }
  0x37   : > { %696 = vmatpush3.bf16.msra.mxu0 %v753_v21 }
  0x38   : > { %697 = vmatprep.subr.bf16.mxu0 %v798_v16 }
  0x3b   : > { %698 = vmatpush3.bf16.msra.mxu0 %v754_v22 }
  0x3c   : > { %699 = vmatprep.subr.bf16.mxu0 %v798_v16 }
  0x3f   : > { %700 = vmatpush3.bf16.msra.mxu0 %v755_v23 }
  0x40   : > { %701 = vmatprep.subr.bf16.mxu0 %v798_v16 }
  0x43   : > { %702 = vmatpush3.bf16.msra.mxu0 %v756_v24 }
  0x46   : > { %704 = vmatmul.mubr.bf16.vlgmr.msra.gmra.mrb[0].mxu0 %v757_v25 }
 0x119   : > { %v456_v26 = vpop.f32.mrb[0].mxu0 }
 0x11a   : > { %v705_v28 = vpop.f32.mrb[1].mxu0  ;;  %v479_v30 = vadd.f32 %v664_v27, %v456_v26  ;;  %497 = sbr.rel (!%p855_p6) target bundleno = 297 (0x129), region = 85 }
 0x11b   : > { %v459_v29 = vpop.f32.mrb[2].mxu0 }
 0x11c   : > { %v480_v31 = vadd.f32 %v664_v27, %v459_v29  ;;  %v706_v32 = vpop.f32.mrb[3].mxu0 }
 0x11e   : > { %v676_v33 = vpack.c.bf16 %v480_v31, %v479_v30 }
 0x120   : > { %677 = vst [vmem:[%s326_s19] sm:$0xff] %v676_v33  }
 0x127   : > { %v518_v34 = vld [vmem:[%s326_s19] sm:$0xf]  ;;  %v520_v35 = vld [vmem:[%s326_s19 + $0x4] sm:$0xf] }
 0x128   : > { %519 = vst [vmem:[%s502_s25] sm:$0xf] %v518_v34  ;;  %521 = vst [vmem:[%s502_s25 + $0xc] sm:$0xf] %v520_v35 }
 0x129 PF: > { %s13_s16 = sadd.s32 1, %s796_s16   ;;  %s927_s12 = smov %s784_s13 }
 0x12a   : > { %p10_p12 = scmp.ge.s32.totalorder %s13_s16, 5   ;;  %s928_s13 = smov %s860_s22 }
 0x12b   : > { %s929_s14 = smov %s792_s15  ;;  %s930_s15 = smov %s932_s17 }
 0x12c   :  { %12 = sbr.rel (!%p10_p12) target bundleno = 3 (0x3), region = 163 }

// kernel: bert_base_uncased_forward.11
= control target key start
LH: loop header
LB: loop body
LE: loop exit
PB: predicated region body
PF: predicated region fallthrough
CT: control target
= control target key end

     0   :  { %v581_v1 = vmov 0   ;;  %v47_v34 = vlaneseq  ;;  %s741_s1 = inlined_call_operand.vmem [shape: bf16[128,256], index: 1, kind: input, shape index: {}]   ;;  %s742_s0 = inlined_call_operand.vmem [shape: bf16[16,128], index: 0, kind: input, shape index: {}]   ;;  %s743_s3 = inlined_call_operand.vmem [shape: bf16[256,128], index: 3, kind: input, shape index: {}]   ;;  %s744_s2 = inlined_call_operand.vmem [shape: f32[1,256], index: 2, kind: input, shape index: {}]   ;;  %s745_s4 = inlined_call_operand.vmem [shape: f32[1,128], index: 4, kind: input, shape index: {}]   ;;  %s746_s5 = inlined_call_operand.vmem [shape: f32[1,128], index: 5, kind: input, shape index: {}]   ;;  %s747_s6 = inlined_call_operand.vmem [shape: f32[1,128], index: 6, kind: input, shape index: {}]   ;;  %s748_s7 = inlined_call_operand.vmem [shape: bf16[16,128], index: 7, kind: output, shape index: {}]  }
   0x1   :  { %v527_v0 = vld [vmem:[%s741_s1 + $0x4] ss:$8 sps:$4 sm:$0xff]   ;;  %175 = vmatprep.mubr.bf16.mxu0 %v581_v1  ;;  %v529_v2 = vld [vmem:[%s741_s1] ss:$8 sps:$4 sm:$0xff]   ;;  %v530_v3 = vld [vmem:[%s741_s1 + $0x14] ss:$8 sps:$4 sm:$0xff]  }
   0x2   :  { %143 = vmatprep.subr.bf16.mxu0 %v527_v0  ;;  %v532_v4 = vld [vmem:[%s741_s1 + $0x10] ss:$8 sps:$4 sm:$0xff]   ;;  %v533_v5 = vld [vmem:[%s741_s1 + $0x24] ss:$8 sps:$4 sm:$0xff]   ;;  %v535_v6 = vld [vmem:[%s741_s1 + $0x20] ss:$8 sps:$4 sm:$0xff]  }
   0x3   :  { %144 = vmatpush1.bf16.msra.mxu0 %v529_v2  ;;  %v536_v7 = vld [vmem:[%s741_s1 + $0x34] ss:$8 sps:$4 sm:$0xff]   ;;  %v538_v8 = vld [vmem:[%s741_s1 + $0x30] ss:$8 sps:$4 sm:$0xff]   ;;  %v539_v9 = vld [vmem:[%s741_s1 + $0x44] ss:$8 sps:$4 sm:$0xff]  }
   0x4   :  { %145 = vmatprep.subr.bf16.mxu0 %v530_v3  ;;  %v541_v10 = vld [vmem:[%s741_s1 + $0x40] ss:$8 sps:$4 sm:$0xff]   ;;  %v542_v11 = vld [vmem:[%s741_s1 + $0x54] ss:$8 sps:$4 sm:$0xff]   ;;  %v544_v12 = vld [vmem:[%s741_s1 + $0x50] ss:$8 sps:$4 sm:$0xff]  }
   0x5   :  { %v545_v13 = vld [vmem:[%s741_s1 + $0x64] ss:$8 sps:$4 sm:$0xff]   ;;  %v547_v14 = vld [vmem:[%s741_s1 + $0x60] ss:$8 sps:$4 sm:$0xff]   ;;  %v548_v15 = vld [vmem:[%s741_s1 + $0x74] ss:$8 sps:$4 sm:$0xff]  }
   0x6   :  { %v550_v16 = vld [vmem:[%s741_s1 + $0x70] ss:$8 sps:$4 sm:$0xff]   ;;  %v673_v17 = vld [vmem:[%s742_s0] sm:$0xff]   ;;  %v554_v20 = vld [vmem:[%s743_s3 + $0x48] sm:$0xff]   ;;  %v48_v35 = vshrl.u32 %v47_v34, 7 }
   0x7   :  { %146 = vmatpush1.bf16.msra.mxu0 %v532_v4  ;;  %v552_v18 = vld [vmem:[%s743_s3 + $0x40] sm:$0xff]   ;;  %v555_v21 = vld [vmem:[%s743_s3 + $0x8] sm:$0xff]   ;;  %v556_v22 = vld [vmem:[%s743_s3 + $0x50] sm:$0xff]  }
   0x8   :  { %147 = vmatprep.subr.bf16.mxu0 %v533_v5  ;;  %v553_v19 = vld [vmem:[%s743_s3] sm:$0xff]   ;;  %504 = vmatprep.subr.bf16.mxu1 %v552_v18  ;;  %v557_v23 = vld [vmem:[%s743_s3 + $0x10] sm:$0xff]   ;;  %v558_v24 = vld [vmem:[%s743_s3 + $0x58] sm:$0xff]   ;;  %v49_v36 = vsub.s32 0, %v48_v35  ;;  %v53_v38 = vsub.s32 1, %v48_v35  ;;  %v401_v35 = vunpack.c.h.bf16 %v673_v17 }
   0x9   :  { %505 = vmatpush3.bf16.msra.mxu1 %v553_v19  ;;  %v559_v25 = vld [vmem:[%s743_s3 + $0x18] sm:$0xff]   ;;  %v560_v26 = vld [vmem:[%s743_s3 + $0x60] sm:$0xff]   ;;  %v562_v28 = vld [vmem:[%s743_s3 + $0x68] sm:$0xff]  }
   0xa   :  { %506 = vmatprep.subr.bf16.mxu1 %v554_v20  ;;  %v561_v27 = vld [vmem:[%s743_s3 + $0x20] sm:$0xff]   ;;  %v563_v29 = vld [vmem:[%s743_s3 + $0x28] sm:$0xff]   ;;  %v564_v30 = vld [vmem:[%s743_s3 + $0x70] sm:$0xff]  }
   0xb   :  { %148 = vmatpush1.bf16.msra.mxu0 %v535_v6  ;;  %v565_v31 = vld [vmem:[%s743_s3 + $0x30] sm:$0xff]   ;;  %v566_v32 = vld [vmem:[%s743_s3 + $0x78] sm:$0xff]   ;;  %v45_v37 = vld [vmem:[%s744_s2] sm:$0x3] }
   0xc   :  { %149 = vmatprep.subr.bf16.mxu0 %v536_v7  ;;  %v567_v33 = vld [vmem:[%s743_s3 + $0x38] sm:$0xff]   ;;  %v50_v39 = vrot.slane %v45_v37, %v49_v36  ;;  %v54_v40 = vrot.slane %v45_v37, %v53_v38 }
   0xd   :  { %507 = vmatpush3.bf16.msra.mxu1 %v555_v21 }
   0xe   :  { %508 = vmatprep.subr.bf16.mxu1 %v556_v22 }
   0xf   :  { %150 = vmatpush1.bf16.msra.mxu0 %v538_v8 }
  0x10   :  { %151 = vmatprep.subr.bf16.mxu0 %v539_v9 }
  0x11   :  { %509 = vmatpush3.bf16.msra.mxu1 %v557_v23 }
  0x12   :  { %510 = vmatprep.subr.bf16.mxu1 %v558_v24 }
  0x13   :  { %152 = vmatpush1.bf16.msra.mxu0 %v541_v10 }
  0x14   :  { %153 = vmatprep.subr.bf16.mxu0 %v542_v11 }
  0x15   :  { %511 = vmatpush3.bf16.msra.mxu1 %v559_v25  ;;  %v476_v25 = vld [vmem:[%s745_s4] ss:$0 sm:$0xff] }
  0x16   :  { %512 = vmatprep.subr.bf16.mxu1 %v560_v26 }
  0x17   :  { %154 = vmatpush1.bf16.msra.mxu0 %v544_v12 }
  0x18   :  { %155 = vmatprep.subr.bf16.mxu0 %v545_v13 }
  0x19   :  { %513 = vmatpush3.bf16.msra.mxu1 %v561_v27 }
  0x1a   :  { %514 = vmatprep.subr.bf16.mxu1 %v562_v28 }
  0x1b   :  { %156 = vmatpush1.bf16.msra.mxu0 %v547_v14 }
  0x1c   :  { %157 = vmatprep.subr.bf16.mxu0 %v548_v15 }
  0x1d   :  { %515 = vmatpush3.bf16.msra.mxu1 %v563_v29  ;;  %v400_v29 = vunpack.c.l.bf16 %v673_v17 }
  0x1e   :  { %516 = vmatprep.subr.bf16.mxu1 %v564_v30 }
  0x1f   :  { %158 = vmatpush1.bf16.msra.mxu0 %v550_v16 }
  0x21   :  { %517 = vmatpush3.bf16.msra.mxu1 %v565_v31 }
  0x22   :  { %176 = vmatmul.mubr.bf16.vlgmr.msra.gmra.mrb[0].mxu0 %v673_v17  ;;  %518 = vmatprep.subr.bf16.mxu1 %v566_v32 }
  0x25   :  { %519 = vmatpush3.bf16.msra.mxu1 %v567_v33 }
  0xf5   :  { %v177_v41 = vpop.f32.mrb[0].mxu0 }
  0xf6   :  { %v178_v42 = vadd.f32 %v177_v41, %v50_v39  ;;  %v179_v43 = vpop.f32.mrb[1].mxu0 }
  0xf7   :  { %v180_v44 = vadd.f32 %v179_v43, %v54_v40  ;;  %v181_v45 = vpop.f32.mrb[2].mxu0 }
  0xf8   :  { %v190_v46 = vmul.f32 0.044715, %v178_v42  ;;  %v182_v47 = vadd.f32 %v181_v45, %v50_v39  ;;  %v183_v48 = vpop.f32.mrb[3].mxu0  ;;  %v186_v11 = vmul.f32 0.5, %v178_v42 }
  0xf9   :  { %v191_v49 = vmul.f32 0.044715, %v180_v44  ;;  %v184_v50 = vadd.f32 %v183_v48, %v54_v40  ;;  %v187_v14 = vmul.f32 0.5, %v180_v44 }
  0xfa   :  { %v194_v51 = vmul.f32 %v190_v46, %v178_v42  ;;  %v192_v52 = vmul.f32 0.044715, %v182_v47  ;;  %v188_v12 = vmul.f32 0.5, %v182_v47 }
  0xfb   :  { %v193_v53 = vmul.f32 0.044715, %v184_v50  ;;  %v195_v54 = vmul.f32 %v191_v49, %v180_v44  ;;  %v189_v15 = vmul.f32 0.5, %v184_v50 }
  0xfc   :  { %v198_v55 = vmul.f32 %v194_v51, %v178_v42  ;;  %v196_v56 = vmul.f32 %v192_v52, %v182_v47  ;;  %v493_v52 = vld [vmem:[%s746_s5] ss:$0 sm:$0xff] }
  0xfd   :  { %v197_v57 = vmul.f32 %v193_v53, %v184_v50  ;;  %v199_v58 = vmul.f32 %v195_v54, %v180_v44 }
  0xfe   :  { %v200_v59 = vmul.f32 %v196_v56, %v182_v47  ;;  %v202_v60 = vadd.f32 %v198_v55, %v178_v42  ;;  %v494_v56 = vld [vmem:[%s747_s6] ss:$0 sm:$0xff] }
  0xff   :  { %v201_v61 = vmul.f32 %v197_v57, %v184_v50  ;;  %v203_v62 = vadd.f32 %v199_v58, %v180_v44 }
 0x100   :  { %v204_v63 = vadd.f32 %v200_v59, %v182_v47  ;;  %v206_v0 = vmul.f32 0.7978846, %v202_v60 }
 0x101   :  { %v205_v1 = vadd.f32 %v201_v61, %v184_v50  ;;  %v207_v2 = vmul.f32 0.7978846, %v203_v62 }
 0x102   :  { %v208_v3 = vmul.f32 0.7978846, %v204_v63  ;;  %569 = vtanh.f32 %v206_v0 }
 0x103   :  { %v209_v4 = vmul.f32 0.7978846, %v205_v1  ;;  %571 = vtanh.f32 %v207_v2 }
 0x104   :  { %573 = vtanh.f32 %v208_v3 }
 0x105   :  { %575 = vtanh.f32 %v209_v4 }
 0x10c   :  { %v570_v5 = vpop.eup %569 }
 0x10d   :  { %v572_v6 = vpop.eup %571  ;;  %v214_v7 = vadd.f32 1.0, %v570_v5 }
 0x10e   :  { %v574_v8 = vpop.eup %573  ;;  %v215_v9 = vadd.f32 1.0, %v572_v6 }
 0x10f   :  { %v576_v10 = vpop.eup %575  ;;  %v216_v13 = vadd.f32 1.0, %v574_v8  ;;  %v218_v18 = vmul.f32 %v214_v7, %v186_v11 }
 0x110   :  { %v217_v16 = vadd.f32 1.0, %v576_v10  ;;  %v219_v20 = vmul.f32 %v215_v9, %v187_v14 }
 0x111   :  { %v220_v19 = vmul.f32 %v216_v13, %v188_v12 }
 0x112   :  { %v221_v21 = vmul.f32 %v217_v16, %v189_v15 }
 0x113   :  { %v222_v22 = vpack.c.bf16 %v220_v19, %v218_v18 }
 0x114   :  { %v223_v23 = vpack.c.bf16 %v221_v21, %v219_v20 }
 0x116   :  { %391 = vmatprep.mubr.bf16.mxu1 %v223_v23 }
 0x117   :  { %392 = vmatmul.mubr.bf16.vlgmr.msra.gmra.mrb[0].mxu1 %v222_v22 }
 0x1ea   :  { %v520_v24 = vpop.f32.mrb[0].mxu1 }
 0x1eb   :  { %v521_v26 = vpop.f32.mrb[1].mxu1 }
 0x1ec   :  { %v522_v27 = vadd.f32 %v521_v26, %v520_v24  ;;  %v523_v28 = vpop.f32.mrb[2].mxu1 }
 0x1ed   :  { %v524_v30 = vpop.f32.mrb[3].mxu1 }
 0x1ee   :  { %v394_v31 = vadd.f32 %v522_v27, %v476_v25  ;;  %v525_v32 = vadd.f32 %v524_v30, %v523_v28 }
 0x1f0   :  { %v397_v33 = vadd.f32 %v525_v32, %v476_v25  ;;  %v402_v34 = vadd.f32 %v400_v29, %v394_v31 }
 0x1f2   :  { %406 = vadd.xlane.f32.xlu0 %v402_v34  ;;  %v403_v36 = vadd.f32 %v401_v35, %v397_v33 }
 0x1f6   :  { %408 = vadd.xlane.f32.xlu0 %v403_v36 }
 0x27f   :  { %v407_v37 = vpop.xlane.xlu0 %406 }
 0x280   :  { %v411_v38 = vmul.f32 0.0078125, %v407_v37 }
 0x282   :  { %v413_v39 = vsub.f32 %v402_v34, %v411_v38 }
 0x283   :  { %v409_v40 = vpop.xlane.xlu0 %408 }
 0x284   :  { %v412_v41 = vmul.f32 0.0078125, %v409_v40  ;;  %v415_v42 = vmul.f32 %v413_v39, %v413_v39 }
 0x286   :  { %v414_v43 = vsub.f32 %v403_v36, %v412_v41  ;;  %417 = vadd.xlane.f32.xlu1 %v415_v42 }
 0x288   :  { %v416_v44 = vmul.f32 %v414_v43, %v414_v43 }
 0x28a   :  { %419 = vadd.xlane.f32.xlu1 %v416_v44 }
 0x313   :  { %v418_v45 = vpop.xlane.xlu1 %417 }
 0x314   :  { %v421_v46 = vmul.f32 0.0078125, %v418_v45 }
 0x316   :  { %v423_v47 = vadd.f32 1e-12, %v421_v46 }
 0x317   :  { %v420_v48 = vpop.xlane.xlu1 %419 }
 0x318   :  { %577 = vrsqrt.f32 %v423_v47  ;;  %v422_v49 = vmul.f32 0.0078125, %v420_v48 }
 0x31a   :  { %v424_v17 = vadd.f32 1e-12, %v422_v49 }
 0x31c   :  { %579 = vrsqrt.f32 %v424_v17 }
 0x322   :  { %v578_v50 = vpop.eup %577 }
 0x323   :  { %v427_v51 = vmul.f32 %v578_v50, %v413_v39 }
 0x325   :  { %v435_v54 = vmul.f32 %v493_v52, %v427_v51 }
 0x326   :  { %v580_v53 = vpop.eup %579 }
 0x327   :  { %v428_v55 = vmul.f32 %v580_v53, %v414_v43  ;;  %v443_v58 = vadd.f32 %v494_v56, %v435_v54 }
 0x329   :  { %v436_v57 = vmul.f32 %v493_v52, %v428_v55 }
 0x32b   :  { %v444_v59 = vadd.f32 %v494_v56, %v436_v57 }
 0x32d   :  { %v502_v60 = vpack.c.bf16 %v444_v59, %v443_v58 }
 0x32f   :  { %503 = vst [vmem:[%s748_s7] sm:$0xff] %v502_v60  }

// kernel: bert_base_uncased_forward.10
= control target key start
LH: loop header
LB: loop body
LE: loop exit
PB: predicated region body
PF: predicated region fallthrough
CT: control target
= control target key end

     0   :  { %s995_s24 = smov 0   ;;  %s1101_s0 = inlined_call_operand.vmem [shape: bf16[2,8,384], index: 0, kind: input, shape index: {}]   ;;  %s1102_s1 = inlined_call_operand.vmem [shape: f32[2,1,8], index: 1, kind: input, shape index: {}]   ;;  %s1103_s2 = inlined_call_operand.vmem [shape: bf16[2,8,128], index: 2, kind: input, shape index: {}]   ;;  %s1104_s3 = inlined_call_operand.vmem [shape: bf16[128,128], index: 3, kind: input, shape index: {}]   ;;  %s1105_s4 = inlined_call_operand.vmem [shape: f32[1,128], index: 4, kind: input, shape index: {}]   ;;  %s1106_s5 = inlined_call_operand.vmem [shape: f32[1,128], index: 5, kind: input, shape index: {}]   ;;  %s1107_s6 = inlined_call_operand.vmem [shape: f32[1,128], index: 6, kind: input, shape index: {}]   ;;  %s1108_s7 = inlined_call_operand.vmem [shape: bf16[2,8,128], index: 7, kind: output, shape index: {}]  }
   0x1 LB: > { %s814_s25 = sadd.s32 4294967295, %s950_s24   ;;  %p818_p0 = scmp.ge.s32.totalorder %s950_s24, 1  ;;  %s950_s24 = sphi %s995_s24, %s17_s24  }
   0x2   : > { %p254_p1 = scmp.lt.s32.totalorder %s950_s24, 3 }
   0x4   : > { %p255_p2 = pnand %p818_p0, %p254_p1 }
   0x5   : > { %p292_p3 = scmp.lt.s32.totalorder (!%p255_p2), %s814_s25, 1  ;;  %v952_v0 = vmov (!%p255_p2), 0.0   ;;  %vm953_vm0 = vmmov (!%p255_p2), 0   ;;  %vm316_vm1 = vcmask (!%p255_p2), 523264   ;;  %vm371_vm2 = vcmask (!%p255_p2), 64512   ;;  %s954_s10 = smov (!%p255_p2), 64  }
   0x6   : > { %258 = sbr.rel (%p255_p2) target bundleno = 1846 (0x736), region = 48  ;;  %863 = vmatprep.subr.bf16.mxu0 (!%p255_p2), %v952_v0  ;;  %865 = vmatprep.mubr.msk.bf16.mxu0 (!%p255_p2), %vm953_vm0, %v952_v0  ;;  %vm387_vm3 = vcmask (!%p255_p2), 1043456   ;;  %v930_v46 = vld [vmem:[%s1104_s3 + $0x20] sm:$0xff] (!%p255_p2)   ;;  %v931_v47 = vld [vmem:[%s1104_s3 + $0x28] sm:$0xff] (!%p255_p2)   ;;  %v932_v48 = vld [vmem:[%s1104_s3 + $0x30] sm:$0xff] (!%p255_p2)  }
   0x7   : > { %869 = vmatprep.subr.bf16.mxu1 (!%p255_p2), %v952_v0  ;;  %871 = vmatprep.mubr.msk.bf16.mxu1 (!%p255_p2), %vm953_vm0, %v952_v0  ;;  %v926_v52 = vld [vmem:[%s1104_s3] sm:$0xff] (!%p255_p2)   ;;  %v927_v54 = vld [vmem:[%s1104_s3 + $0x8] sm:$0xff] (!%p255_p2)   ;;  %v928_v55 = vld [vmem:[%s1104_s3 + $0x10] sm:$0xff] (!%p255_p2)  }
   0x8   : > { %v929_v56 = vld [vmem:[%s1104_s3 + $0x18] sm:$0xff] (!%p255_p2)  }
   0x9   : > { %v933_v58 = vld [vmem:[%s1104_s3 + $0x38] sm:$0xff] (!%p255_p2)  }
   0xd   : > { %s1110_s25 = smov (!%p292_p3, %s814_s25), 1 }
   0xe   : > { %s911_s26 = smul.u32 12, %s1110_s25  ;;  %s299_s9 = scalar_lea.vmem %s1102_s1, %s1110_s25 }
   0xf   : > { %v824_v5 = vld [vmem:[%s299_s9] ss:$0 sm:$0xff] }
  0x10   : > { %s1015_s29 = scalar_lea.vmem %s1101_s0, %s911_s26 }
  0x11   : > { %v309_v1 = vld [vmem:[%s1015_s29] sm:$0xff]  ;;  %v310_v18 = vld [vmem:[%s1015_s29 + $0x8] sm:$0xf]  ;;  %s820_s29 = sshll.u32 %s1110_s25, 2 }
  0x12   : > { %v822_v2 = vcombine.high %v309_v1, %v309_v1  ;;  %v826_v12 = vcombine.low %v309_v1, %v309_v1  ;;  %v389_v19 = vsel %vm387_vm3, %v310_v18, 0  ;;  %v828_v38 = vcombine.low %v310_v18, %v310_v18  ;;  %s303_s9 = scalar_lea.vmem %s1103_s2, %s820_s29  ;;  %s307_s17 = scalar_lea.vmem %s1108_s7, %s820_s29 }
  0x13   : > { %870 = vmatpush3.bf16.msra.mxu1 %v389_v19 }
  0x14   : > { %v321_v3 = vsel %vm316_vm1, %v822_v2, 0  ;;  %444 = vrot.lane.b32.xlu1 %v822_v2, %s954_s10  ;;  %875 = vmatprep.subr.bf16.mxu1 %v952_v0 }
  0x15   : > { %864 = vmatpush3.bf16.xpose.msra.mxu0 %v321_v3 }
  0x16   : > { %881 = vmatprep.subr.bf16.mxu0 %v952_v0 }
  0x18   : > { %442 = vrot.lane.b32.xlu1 %v826_v12, %s954_s10 }
  0x1c   : > { %866 = vmatmul.mubr.msk.bf16.vlgmr.msra.gmra.mrb[0].mxu0 %vm316_vm1, %v309_v1 }
  0x1d   : > { %883 = vmatprep.mubr.msk.bf16.mxu0 %vm953_vm0, %v952_v0 }
  0x86   : > { %v445_v22 = vpop.permute.xlu1 %444 }
  0x87   : > { %v450_v24 = vsel %vm316_vm1, %v445_v22, 0  ;;  %v841_v22 = vld [vmem:[%s1106_s5] ss:$0 sm:$0xff] }
  0x8a   : > { %v443_v26 = vpop.permute.xlu1 %442 }
  0xef   : > { %v357_v4 = vpop.f32.mrb[0].mxu0 }
  0xf0   : > { %v363_v6 = vmul.f32 0.125, %v357_v4  ;;  %v867_v7 = vpop.f32.mrb[1].mxu0  ;;  %v312_v4 = vld [vmem:[%s303_s9] sm:$0xf] }
  0xf1   : > { %v360_v8 = vpop.f32.mrb[2].mxu0 }
  0xf2   : > { %v868_v9 = vpop.f32.mrb[3].mxu0  ;;  %v370_v10 = vadd.f32 %v824_v5, %v363_v6  ;;  %v840_v6 = vld [vmem:[%s1105_s4] ss:$0 sm:$0xff] }
  0xf3   : > { %v708_v9 = vunpack.c.l.bf16 %v312_v4 }
  0xf4   : > { %v372_v11 = vsel %vm371_vm2, %v370_v10, -inf }
  0xf5   : > { %373 = vmax.xlane.f32.xlu0 %v372_v11 }
 0x182   : > { %v374_v13 = vpop.xlane.xlu0 %373 }
 0x183   : > { %v375_v14 = vsub.f32 %v370_v10, %v374_v13 }
 0x185   : > { %v376_v15 = vmul.f32 1.442695, %v375_v14 }
 0x187   : > { %934 = vpow2.f32 %v376_v15 }
 0x191   : > { %v935_v16 = vpop.eup %934 }
 0x192   : > { %v378_v17 = vsel %vm371_vm2, %v935_v16, 0.0 }
 0x193   : > { %379 = vadd.xlane.f32.xlu0 %v378_v17 }
 0x220   : > { %v380_v20 = vpop.xlane.xlu0 %379 }
 0x221   : > { %936 = vrcp.f32 %v380_v20 }
 0x22b   : > { %v937_v21 = vpop.eup %936 }
 0x22c   : > { %v382_v23 = vmul.f32 %v937_v21, %v935_v16 }
 0x22e   : > { %v383_v25 = vpack.c.bf16 %v382_v23, %v382_v23 }
 0x230   : > { %872 = vmatmul.mubr.msk.bf16.vlgmr.msra.gmra.mrb[0].mxu1 %vm371_vm2, %v383_v25 }
 0x231   : > { %876 = vmatpush3.bf16.xpose.msra.mxu1 %v450_v24  ;;  %877 = vmatprep.mubr.msk.bf16.mxu1 %vm953_vm0, %v952_v0  ;;  %v842_v24 = vld [vmem:[%s1107_s6] ss:$0 sm:$0xff] }
 0x232   : > { %887 = vmatprep.subr.bf16.mxu1 %v952_v0 }
 0x238   : > { %878 = vmatmul.mubr.msk.bf16.vlgmr.msra.gmra.mrb[4].mxu1 %vm316_vm1, %v443_v26 }
 0x239   : > { %895 = vmatprep.mubr.msk.bf16.mxu1 %vm953_vm0, %v952_v0  ;;  %888 = vmatpush3.bf16.msra.mxu1 %v930_v46 }
 0x23a   : > { %889 = vmatprep.subr.bf16.mxu1 %v952_v0 }
 0x23d   : > { %890 = vmatpush3.bf16.msra.mxu1 %v931_v47 }
 0x23e   : > { %891 = vmatprep.subr.bf16.mxu1 %v952_v0 }
 0x241   : > { %892 = vmatpush3.bf16.msra.mxu1 %v932_v48 }
 0x242   : > { %893 = vmatprep.subr.bf16.mxu1 %v952_v0 }
 0x245   : > { %894 = vmatpush3.bf16.msra.mxu1 %v933_v58 }
 0x303   : > { %v425_v27 = vpop.f32.mrb[0].mxu1 }
 0x304   : > { %v873_v28 = vpop.f32.mrb[1].mxu1  ;;  %v431_v57 = vpack.c.bf16 %v425_v27, %v425_v27 }
 0x305   : > { %v428_v29 = vpop.f32.mrb[2].mxu1 }
 0x306   : > { %v874_v30 = vpop.f32.mrb[3].mxu1 }
 0x30b   : > { %v486_v31 = vpop.f32.mrb[4].mxu1 }
 0x30c   : > { %v492_v32 = vmul.f32 0.125, %v486_v31  ;;  %v879_v33 = vpop.f32.mrb[5].mxu1 }
 0x30d   : > { %v489_v34 = vpop.f32.mrb[6].mxu1 }
 0x30e   : > { %v880_v35 = vpop.f32.mrb[7].mxu1  ;;  %v493_v36 = vadd.f32 %v824_v5, %v492_v32 }
 0x310   : > { %v494_v37 = vsel %vm371_vm2, %v493_v36, -inf }
 0x311   : > { %495 = vmax.xlane.f32.xlu0 %v494_v37 }
 0x327   : > { %509 = vrot.lane.b32.xlu0 %v828_v38, %s954_s10 }
 0x39e   : > { %v496_v39 = vpop.xlane.xlu0 %495 }
 0x39f   : > { %v497_v40 = vsub.f32 %v493_v36, %v496_v39 }
 0x3a1   : > { %v498_v41 = vmul.f32 1.442695, %v497_v40 }
 0x3a2   : > { %v510_v44 = vpop.permute.xlu0 %509 }
 0x3a3   : > { %938 = vpow2.f32 %v498_v41  ;;  %v515_v45 = vsel %vm387_vm3, %v510_v44, 0 }
 0x3a4   : > { %882 = vmatpush3.bf16.msra.mxu0 %v515_v45 }
 0x3a5   : > { %899 = vmatprep.subr.bf16.mxu0 %v952_v0 }
 0x3ad   : > { %v939_v42 = vpop.eup %938 }
 0x3ae   : > { %v500_v43 = vsel %vm371_vm2, %v939_v42, 0.0 }
 0x3af   : > { %501 = vadd.xlane.f32.xlu1 %v500_v43 }
 0x43c   : > { %v502_v49 = vpop.xlane.xlu1 %501 }
 0x43d   : > { %940 = vrcp.f32 %v502_v49 }
 0x447   : > { %v941_v50 = vpop.eup %940 }
 0x448   : > { %v504_v51 = vmul.f32 %v941_v50, %v939_v42 }
 0x44a   : > { %v505_v53 = vpack.c.bf16 %v504_v51, %v504_v51 }
 0x44c   : > { %884 = vmatmul.mubr.msk.bf16.vlgmr.msra.gmra.mrb[4].mxu0 %vm371_vm2, %v505_v53 }
 0x44d   : > { %900 = vmatpush3.bf16.msra.mxu0 %v926_v52  ;;  %907 = vmatprep.mubr.msk.bf16.mxu0 %vm953_vm0, %v952_v0 }
 0x44e   : > { %901 = vmatprep.subr.bf16.mxu0 %v952_v0 }
 0x451   : > { %902 = vmatpush3.bf16.msra.mxu0 %v927_v54 }
 0x452   : > { %903 = vmatprep.subr.bf16.mxu0 %v952_v0 }
 0x455   : > { %904 = vmatpush3.bf16.msra.mxu0 %v928_v55 }
 0x456   : > { %905 = vmatprep.subr.bf16.mxu0 %v952_v0 }
 0x459   : > { %906 = vmatpush3.bf16.msra.mxu0 %v929_v56 }
 0x45c   : > { %908 = vmatmul.mubr.msk.bf16.vlgmr.msra.gmra.mrb[8].mxu0 %vm316_vm1, %v431_v57 }
 0x51f   : > { %v551_v59 = vpop.f32.mrb[4].mxu0 }
 0x520   : > { %v557_v60 = vpack.c.bf16 %v551_v59, %v551_v59  ;;  %v885_v61 = vpop.f32.mrb[5].mxu0 }
 0x521   : > { %v554_v62 = vpop.f32.mrb[6].mxu0 }
 0x522   : > { %v886_v63 = vpop.f32.mrb[7].mxu0  ;;  %896 = vmatmul.mubr.msk.bf16.vlgmr.msra.gmra.mrb[8].mxu1 %vm316_vm1, %v557_v60 }
 0x52f   : > { %v694_v1 = vpop.f32.mrb[8].mxu0 }
 0x530   : > { %v909_v2 = vpop.f32.mrb[9].mxu0 }
 0x531   : > { %v697_v0 = vpop.f32.mrb[10].mxu0 }
 0x532   : > { %v910_v3 = vpop.f32.mrb[11].mxu0 }
 0x5f5   : > { %v627_v5 = vpop.f32.mrb[8].mxu1 }
 0x5f6   : > { %v695_v7 = vadd.f32 %v694_v1, %v627_v5  ;;  %v897_v8 = vpop.f32.mrb[9].mxu1 }
 0x5f7   : > { %v630_v10 = vpop.f32.mrb[10].mxu1 }
 0x5f8   : > { %v707_v11 = vadd.f32 %v840_v6, %v695_v7  ;;  %v898_v12 = vpop.f32.mrb[11].mxu1 }
 0x5fa   : > { %v709_v13 = vadd.f32 %v708_v9, %v707_v11 }
 0x5fc   : > { %712 = vadd.xlane.f32.xlu0 %v709_v13 }
 0x689   : > { %v713_v14 = vpop.xlane.xlu0 %712 }
 0x68a   : > { %v715_v15 = vmul.f32 0.0078125, %v713_v14 }
 0x68c   : > { %v716_v16 = vsub.f32 %v709_v13, %v715_v15 }
 0x68e   : > { %v717_v17 = vmul.f32 %v716_v16, %v716_v16 }
 0x690   : > { %718 = vadd.xlane.f32.xlu1 %v717_v17 }
 0x71d   : > { %v719_v18 = vpop.xlane.xlu1 %718 }
 0x71e   : > { %v720_v19 = vmul.f32 0.0078125, %v719_v18 }
 0x720   : > { %v721_v20 = vadd.f32 1e-12, %v720_v19 }
 0x722   : > { %942 = vrsqrt.f32 %v721_v20 }
 0x72c   : > { %v943_v21 = vpop.eup %942 }
 0x72d   : > { %v723_v23 = vmul.f32 %v943_v21, %v716_v16 }
 0x72f   : > { %v730_v25 = vmul.f32 %v841_v22, %v723_v23 }
 0x731   : > { %v737_v26 = vadd.f32 %v842_v24, %v730_v25 }
 0x733   : > { %v738_v27 = vpack.c.bf16 %v737_v26, %v737_v26 }
 0x735   : > { %739 = vst [vmem:[%s307_s17] sm:$0xf] %v738_v27 }
 0x736 PF: > { %s17_s24 = sadd.s32 1, %s950_s24  }
 0x737   : > { %p14_p4 = scmp.ge.s32.totalorder %s17_s24, 4  }
 0x739   :  { %16 = sbr.rel (!%p14_p4) target bundleno = 1 (0x1), region = 84 }

// kernel: bert_base_uncased_forward.15
= control target key start
LH: loop header
LB: loop body
LE: loop exit
PB: predicated region body
PF: predicated region fallthrough
CT: control target
= control target key end

     0   :  { %v214_v0 = vmov 0.0   ;;  %vm215_vm0 = vmmov 0   ;;  %vm144_vm1 = vcmask 1041408   ;;  %vm156_vm2 = vcmask 1024   ;;  %s285_s1 = inlined_call_operand.vmem [shape: bf16[128,128], index: 1, kind: input, shape index: {}]   ;;  %s286_s0 = inlined_call_operand.vmem [shape: bf16[2,128], index: 0, kind: input, shape index: {}]   ;;  %s287_s4 = inlined_call_operand.<no memory space> [shape: f32[1,1], index: 4, kind: input, shape index: {}]   ;;  %s288_s2 = inlined_call_operand.vmem [shape: f32[1,128], index: 2, kind: input, shape index: {}]   ;;  %s289_s3 = inlined_call_operand.vmem [shape: f32[1,128], index: 3, kind: input, shape index: {}]   ;;  %s290_s5 = inlined_call_operand.vmem [shape: f32[2,1], index: 5, kind: output, shape index: {}]  }
   0x1   :  { %182 = vmatprep.subr.bf16.mxu0 %v214_v0  ;;  %v204_v1 = vld [vmem:[%s285_s1] sm:$0xff]   ;;  %198 = vmatprep.mubr.msk.bf16.mxu0 %vm215_vm0, %v214_v0  ;;  %v205_v2 = vld [vmem:[%s285_s1 + $0x8] sm:$0xff]   ;;  %v206_v3 = vld [vmem:[%s285_s1 + $0x10] sm:$0xff]   ;;  %v10_v10 = vstv %s287_s4 }
   0x2   :  { %183 = vmatpush3.bf16.msra.mxu0 %v204_v1  ;;  %v207_v4 = vld [vmem:[%s285_s1 + $0x18] sm:$0xff]   ;;  %v208_v5 = vld [vmem:[%s285_s1 + $0x20] sm:$0xff]   ;;  %v209_v6 = vld [vmem:[%s285_s1 + $0x28] sm:$0xff]   ;;  %11 = vst [vmem:[#allocation2] sm:$0x1] %v10_v10 }
   0x3   :  { %184 = vmatprep.subr.bf16.mxu0 %v214_v0  ;;  %v210_v7 = vld [vmem:[%s285_s1 + $0x30] sm:$0xff]   ;;  %v211_v8 = vld [vmem:[%s285_s1 + $0x38] sm:$0xff]   ;;  %v23_v9 = vld [vmem:[%s286_s0] sm:$0x1] }
   0x4   :  { %v162_v11 = vld [vmem:[%s288_s2] ss:$0 sm:$0xff] }
   0x5   :  { %v171_v17 = vld [vmem:[%s289_s3] ss:$0 sm:$0xff] }
   0x6   :  { %185 = vmatpush3.bf16.msra.mxu0 %v205_v2 }
   0x7   :  { %186 = vmatprep.subr.bf16.mxu0 %v214_v0 }
   0x9   :  { %v172_v21 = vld [vmem:[#allocation2] ss:$0 sm:$0xff] }
   0xa   :  { %187 = vmatpush3.bf16.msra.mxu0 %v206_v3 }
   0xb   :  { %188 = vmatprep.subr.bf16.mxu0 %v214_v0 }
   0xe   :  { %189 = vmatpush3.bf16.msra.mxu0 %v207_v4 }
   0xf   :  { %190 = vmatprep.subr.bf16.mxu0 %v214_v0 }
  0x12   :  { %191 = vmatpush3.bf16.msra.mxu0 %v208_v5 }
  0x13   :  { %192 = vmatprep.subr.bf16.mxu0 %v214_v0 }
  0x16   :  { %193 = vmatpush3.bf16.msra.mxu0 %v209_v6 }
  0x17   :  { %194 = vmatprep.subr.bf16.mxu0 %v214_v0 }
  0x1a   :  { %195 = vmatpush3.bf16.msra.mxu0 %v210_v7 }
  0x1b   :  { %196 = vmatprep.subr.bf16.mxu0 %v214_v0 }
  0x1e   :  { %197 = vmatpush3.bf16.msra.mxu0 %v211_v8 }
  0x21   :  { %199 = vmatmul.mubr.bf16.vlgmr.msra.gmra.mrb[0].mxu0 %v23_v9 }
  0xf4   :  { %v129_v12 = vpop.f32.mrb[0].mxu0 }
  0xf5   :  { %v130_v13 = vadd.f32 %v162_v11, %v129_v12  ;;  %v200_v14 = vpop.f32.mrb[1].mxu0 }
  0xf6   :  { %v132_v15 = vpop.f32.mrb[2].mxu0 }
  0xf7   :  { %212 = vtanh.f32 %v130_v13  ;;  %v201_v16 = vpop.f32.mrb[3].mxu0 }
 0x101   :  { %v213_v18 = vpop.eup %212 }
 0x102   :  { %v143_v19 = vmul.f32 %v213_v18, %v171_v17 }
 0x104   :  { %v145_v20 = vsel %vm144_vm1, %v143_v19, 0.0 }
 0x105   :  { %146 = vadd.xlane.f32.xlu0 %v145_v20 }
 0x192   :  { %v147_v22 = vpop.xlane.xlu0 %146 }
 0x193   :  { %v155_v23 = vadd.f32 %v172_v21, %v147_v22 }
 0x195   :  { %157 = vst.msk [vmem:[%s290_s5] sm:$0x3] %vm156_vm2, %v155_v23 }

</bundles_post_ra>
